<compile_context>
chip_gen: v7x
topology: tpu7x:2x2x1
jax: 0.10.0
libtpu: 0.0.40
codegen_flags: <defaults>
</compile_context>

<pallas_src>
import math

import jax
import jax.numpy as jnp
import numpy as np
from jax.experimental import pallas as pl
from jax.experimental.pallas import tpu as pltpu


def _make_encoder_kernel(num_heads, L, D, compute_dtype):
    hd = D // num_heads
    scale = 1.0 / math.sqrt(hd)
    neg = -1e30          # finite causal-mask value (NaN-proof vs. -inf)
    eps = 1e-5

    def kernel(x_ref, wqkv_ref, wo_ref, w1_ref, b1_ref, w2_ref, b2_ref,
               g1_ref, be1_ref, g2_ref, be2_ref, out_ref, attn_ref, o_scratch):
        TB = x_ref.shape[0]
        M = TB * L
        cdt = compute_dtype

        x = x_ref[...]                                     # (TB, L, D) f32
        xm = x.reshape(M, D)                               # collapse leading dims (cheap)
        xc = xm.astype(cdt)

        # ---- fused QKV projection: one (M, D) @ (D, 3D) MXU pass for all heads ----
        qkv = jnp.dot(xc, wqkv_ref[...], preferred_element_type=jnp.float32)   # (M, 3D) f32
        q = (qkv[:, :D] * scale).reshape(TB, L, D)          # fold 1/sqrt(hd) into q once
        k = qkv[:, D:2 * D].reshape(TB, L, D)
        v = qkv[:, 2 * D:].reshape(TB, L, D)

        # causal mask shared by all heads
        row = jax.lax.broadcasted_iota(jnp.int32, (1, L, L), 1)
        col = jax.lax.broadcasted_iota(jnp.int32, (1, L, L), 2)
        causal = col <= row

        # ---- per-head causal softmax attention (statically unrolled over heads) ----
        for h in range(num_heads):
            sl = slice(h * hd, (h + 1) * hd)
            qh = q[:, :, sl].astype(cdt)
            kh = k[:, :, sl].astype(cdt)
            vh = v[:, :, sl].astype(cdt)
            s = jnp.einsum("bqd,bkd->bqk", qh, kh,
                           preferred_element_type=jnp.float32)                 # (TB, L, L)
            s = jnp.where(causal, s, neg)
            m = jnp.max(s, axis=-1, keepdims=True)
            p = jnp.exp(s - m)
            a = p / jnp.sum(p, axis=-1, keepdims=True)      # exact denom (attn is an output)
            attn_ref[:, h] = a.astype(attn_ref.dtype)
            o_h = jnp.einsum("bqk,bkd->bqd", a.astype(cdt), vh,
                             preferred_element_type=jnp.float32)               # (TB, L, hd)
            o_scratch[:, sl] = o_h.reshape(M, hd)           # concat heads in VMEM scratch

        # ---- single output projection with full K = D contraction ----
        attn_out = jnp.dot(o_scratch[...].astype(cdt), wo_ref[...],
                           preferred_element_type=jnp.float32)                 # (M, D) f32

        # ---- residual + LayerNorm1 (f32) ----
        h1 = xm + attn_out
        mu1 = jnp.mean(h1, axis=-1, keepdims=True)
        var1 = jnp.mean(jnp.square(h1 - mu1), axis=-1, keepdims=True)
        n1 = (h1 - mu1) * jax.lax.rsqrt(var1 + eps) * g1_ref[...] + be1_ref[...]

        # ---- FFN: Linear -> ReLU -> Linear ----
        f = jnp.dot(n1.astype(cdt), w1_ref[...], preferred_element_type=jnp.float32) + b1_ref[...]
        f = jnp.maximum(f, 0.0)
        y = jnp.dot(f.astype(cdt), w2_ref[...], preferred_element_type=jnp.float32) + b2_ref[...]

        # ---- residual + LayerNorm2 (f32) ----
        h2 = n1 + y
        mu2 = jnp.mean(h2, axis=-1, keepdims=True)
        var2 = jnp.mean(jnp.square(h2 - mu2), axis=-1, keepdims=True)
        n2 = (h2 - mu2) * jax.lax.rsqrt(var2 + eps) * g2_ref[...] + be2_ref[...]

        out_ref[...] = n2.astype(out_ref.dtype)             # lane-dense (TB*L, D) slab store

    return kernel


def encoder_block(x, params, num_heads, compute_dtype=jnp.float32,
                  attn_dtype=jnp.float32):
    """x: (B, L, D) float32. Returns (out (B, L, D), attn (B, H, L, L))."""
    B, L, D = x.shape
    H = num_heads
    F = params["w1"].shape[1]
    cdt = compute_dtype
    wsz = jnp.dtype(cdt).itemsize
    asz = jnp.dtype(attn_dtype).itemsize

    # fused [Wq | Wk | Wv] weight, stored as (in, out) and applied as x @ W
    wqkv = jnp.concatenate([params["wq"], params["wk"], params["wv"]], axis=1).astype(cdt)
    wo = params["wo"].astype(cdt)
    w1 = params["w1"].astype(cdt)
    w2 = params["w2"].astype(cdt)

    # biases / LayerNorm params stay f32 (tiny, precision-critical)
    b1 = params["b1"].reshape(1, F).astype(jnp.float32)
    b2 = params["b2"].reshape(1, D).astype(jnp.float32)
    g1 = params["ln1_g"].reshape(1, D).astype(jnp.float32)
    be1 = params["ln1_b"].reshape(1, D).astype(jnp.float32)
    g2 = params["ln2_g"].reshape(1, D).astype(jnp.float32)
    be2 = params["ln2_b"].reshape(1, D).astype(jnp.float32)

    # ---- batch-tile selection: batch rows into the MXU M dimension (M = TB*L) ----
    per_row_bytes = 2 * L * D * 4 + H * L * L * (asz + 16) + L * (7 * D + 2 * F) * 4
    row_budget = 8 << 20
    candidates = [t for t in range(1, B + 1)
                  if B % t == 0
                  and (t == B or (t * L) % 8 == 0)           # keep (B*L, D) out slab tileable
                  and t * per_row_bytes <= row_budget]
    reaching = [t for t in candidates if t * L >= 128]        # fills a 128-row MXU pass
    if reaching:
        TB = min(reaching)     # smallest tile that fills the MXU -> max grid parallelism
    elif candidates:
        TB = max(candidates)   # tiny problem: one big step (fewest grid-step overheads)
    else:
        TB = B
    grid = (B // TB,)

    kernel = _make_encoder_kernel(H, L, D, cdt)

    def fixed(shape):
        nd = len(shape)
        return pl.BlockSpec(shape, lambda b, _nd=nd: (0,) * _nd)

    in_specs = [
        pl.BlockSpec((TB, L, D), lambda b: (b, 0, 0)),        # x
        fixed((D, 3 * D)),                                    # fused qkv weight
        fixed((D, D)),                                        # Wo
        fixed((D, F)), fixed((1, F)),                         # w1, b1
        fixed((F, D)), fixed((1, D)),                         # w2, b2
        fixed((1, D)), fixed((1, D)),                         # ln1 gamma, beta
        fixed((1, D)), fixed((1, D)),                         # ln2 gamma, beta
    ]
    out_specs = [
        pl.BlockSpec((TB * L, D), lambda b: (b, 0)),          # lane-dense output slab
        pl.BlockSpec((TB, H, L, L), lambda b: (b, 0, 0, 0)),  # attention weights block
    ]
    out_shape = (
        jax.ShapeDtypeStruct((B * L, D), x.dtype),
        jax.ShapeDtypeStruct((B, H, L, L), attn_dtype),
    )
    scratch_shapes = [pltpu.VMEM((TB * L, D), jnp.float32)]   # head-concat scratch

    # ---- VMEM budget: working set + headroom, capped below physical capacity ----
    blk_bytes = (2 * TB * L * D * 4
                 + TB * H * L * L * asz
                 + (4 * D * D + 2 * D * F) * wsz
                 + (F + 5 * D) * 4)
    interm_bytes = TB * L * (8 * D + 2 * F) * 4 + 4 * TB * H * L * L * 4
    vmem_need = 2 * blk_bytes + interm_bytes + (4 << 20)
    try:
        vmem_cap = int(pltpu.get_tpu_info().vmem_capacity_bytes)
    except Exception:
        vmem_cap = 64 << 20                                   # conservative (v7x per-core)
    vmem_limit = int(min(max(vmem_need, 16 << 20), (vmem_cap * 3) // 4))

    flops = int(2 * B * L * (4 * D * D + 2 * L * D + 2 * D * F))
    transcendentals = int(B * H * L * L + 2 * B * L)
    bytes_accessed = int(2 * B * L * D * 4 + B * H * L * L * asz
                         + (4 * D * D + 2 * D * F) * wsz + (F + 5 * D) * 4)

    out_flat, attn = pl.pallas_call(
        kernel,
        out_shape=out_shape,
        grid=grid,
        in_specs=in_specs,
        out_specs=out_specs,
        scratch_shapes=scratch_shapes,
        compiler_params=pltpu.CompilerParams(
            dimension_semantics=("parallel",),
            vmem_limit_bytes=vmem_limit),
        cost_estimate=pl.CostEstimate(
            flops=flops, transcendentals=transcendentals, bytes_accessed=bytes_accessed),
    )(x, wqkv, wo, w1, b1, w2, b2, g1, be1, g2, be2)

    return out_flat.reshape(B, L, D), attn


# --------- pure-JAX reference (mirrors the PyTorch forward) ----------
def encoder_block_ref(x, params, num_heads):
    B, L, D = x.shape
    hd = D // num_heads
    q = x @ params["wq"]
    k = x @ params["wk"]
    v = x @ params["wv"]
    mask = np.tril(np.ones((L, L), dtype=bool))
    outs, attns = [], []
    for h in range(num_heads):
        sl = slice(h * hd, (h + 1) * hd)
        s = jnp.einsum("bld,bmd->blm", q[:, :, sl], k[:, :, sl]) / math.sqrt(hd)
        s = jnp.where(mask, s, -jnp.inf)
        a = jax.nn.softmax(s, axis=-1)
        attns.append(a[:, None])
        outs.append(jnp.einsum("blm,bmd->bld", a, v[:, :, sl]))
    o = jnp.concatenate(outs, axis=-1) @ params["wo"]
    attn = jnp.concatenate(attns, axis=1)

    def ln(h, g, b):
        mu = jnp.mean(h, axis=-1, keepdims=True)
        var = jnp.mean(jnp.square(h - mu), axis=-1, keepdims=True)
        return (h - mu) * jax.lax.rsqrt(var + 1e-5) * g + b

    n1 = ln(x + o, params["ln1_g"], params["ln1_b"])
    f = jnp.maximum(n1 @ params["w1"] + params["b1"], 0.0) @ params["w2"] + params["b2"]
    n2 = ln(n1 + f, params["ln2_g"], params["ln2_b"])
    return n2, attn


def xavier_uniform(key, shape):
    fan_in, fan_out = shape
    bound = math.sqrt(6.0 / (fan_in + fan_out))
    return jax.random.uniform(key, shape, jnp.float32, -bound, bound)


if __name__ == "__main__":
    B, L, D, H, F = 2, 8, 32, 4, 64

    key = jax.random.PRNGKey(0)
    keys = jax.random.split(key, 10)

    params = {
        # attention projections (xavier uniform, no bias), stored as (in, out)
        "wq": xavier_uniform(keys[0], (D, D)),
        "wk": xavier_uniform(keys[1], (D, D)),
        "wv": xavier_uniform(keys[2], (D, D)),
        "wo": xavier_uniform(keys[3], (D, D)),
        # feedforward (with bias)
        "w1": xavier_uniform(keys[4], (D, F)),
        "b1": 0.01 * jax.random.normal(keys[5], (F,), jnp.float32),
        "w2": xavier_uniform(keys[6], (F, D)),
        "b2": 0.01 * jax.random.normal(keys[7], (D,), jnp.float32),
        # layer norms (torch default init: gamma=1, beta=0)
        "ln1_g": jnp.ones((D,), jnp.float32),
        "ln1_b": jnp.zeros((D,), jnp.float32),
        "ln2_g": jnp.ones((D,), jnp.float32),
        "ln2_b": jnp.zeros((D,), jnp.float32),
    }

    x = jax.random.normal(keys[8], (B, L, D), jnp.float32)
    out_want, attn_want = encoder_block_ref(x, params, H)

    # f32 MXU-operand path
    out, attn = jax.block_until_ready(encoder_block(x, params, H))
    assert np.allclose(np.asarray(out), np.asarray(out_want), atol=1e-2, rtol=1e-2)
    assert np.allclose(np.asarray(attn), np.asarray(attn_want), atol=5e-3, rtol=5e-3)

    # bf16 MXU-operand path with bf16 attention writeback (v6e/v7x fast path)
    out_bf, attn_bf = jax.block_until_ready(
        encoder_block(x, params, H, compute_dtype=jnp.bfloat16, attn_dtype=jnp.bfloat16))
    assert np.allclose(np.asarray(out_bf.astype(jnp.float32)),
                       np.asarray(out_want), atol=2e-1, rtol=2e-1)
    assert np.allclose(np.asarray(attn_bf.astype(jnp.float32)),
                       np.asarray(attn_want), atol=5e-2, rtol=5e-2)

    print("KERNEL_OK")
</pallas_src>

<mosaic_0001>
module attributes {stable_mosaic.version = 11 : i64} {
  func.func @kernel(%arg0: i32, %arg1: memref<2x8x32xf32, #tpu.memory_space<vmem>>, %arg2: memref<32x96xf32, #tpu.memory_space<vmem>>, %arg3: memref<32x32xf32, #tpu.memory_space<vmem>>, %arg4: memref<32x64xf32, #tpu.memory_space<vmem>>, %arg5: memref<1x64xf32, #tpu.memory_space<vmem>>, %arg6: memref<64x32xf32, #tpu.memory_space<vmem>>, %arg7: memref<1x32xf32, #tpu.memory_space<vmem>>, %arg8: memref<1x32xf32, #tpu.memory_space<vmem>>, %arg9: memref<1x32xf32, #tpu.memory_space<vmem>>, %arg10: memref<1x32xf32, #tpu.memory_space<vmem>>, %arg11: memref<1x32xf32, #tpu.memory_space<vmem>>, %arg12: memref<16x32xf32, #tpu.memory_space<vmem>>, %arg13: memref<2x4x8x8xf32, #tpu.memory_space<vmem>>, %arg14: memref<16x32xf32, #tpu.memory_space<vmem>>) attributes {dimension_semantics = [#tpu.dimension_semantics<parallel>], iteration_bounds = array<i64: 1>, scalar_prefetch = 0 : i64, scratch_operands = 1 : i64, tpu.core_type = #tpu.core_type<tc>, window_params = [{transform_indices = @transform_0, window_bounds = array<i64: 2, 8, 32>}, {pipeline_mode = #tpu.pipeline_mode<synchronous>, transform_indices = @transform_1, window_bounds = array<i64: 32, 96>}, {pipeline_mode = #tpu.pipeline_mode<synchronous>, transform_indices = @transform_2, window_bounds = array<i64: 32, 32>}, {pipeline_mode = #tpu.pipeline_mode<synchronous>, transform_indices = @transform_3, window_bounds = array<i64: 32, 64>}, {pipeline_mode = #tpu.pipeline_mode<synchronous>, transform_indices = @transform_4, window_bounds = array<i64: 1, 64>}, {pipeline_mode = #tpu.pipeline_mode<synchronous>, transform_indices = @transform_5, window_bounds = array<i64: 64, 32>}, {pipeline_mode = #tpu.pipeline_mode<synchronous>, transform_indices = @transform_6, window_bounds = array<i64: 1, 32>}, {pipeline_mode = #tpu.pipeline_mode<synchronous>, transform_indices = @transform_7, window_bounds = array<i64: 1, 32>}, {pipeline_mode = #tpu.pipeline_mode<synchronous>, transform_indices = @transform_8, window_bounds = array<i64: 1, 32>}, {pipeline_mode = #tpu.pipeline_mode<synchronous>, transform_indices = @transform_9, window_bounds = array<i64: 1, 32>}, {pipeline_mode = #tpu.pipeline_mode<synchronous>, transform_indices = @transform_10, window_bounds = array<i64: 1, 32>}, {transform_indices = @transform_11, window_bounds = array<i64: 16, 32>}, {transform_indices = @transform_12, window_bounds = array<i64: 2, 4, 8, 8>}]} {
    %c0 = arith.constant 0 : index
    %c0_0 = arith.constant 0 : index
    %c0_1 = arith.constant 0 : index
    %0 = vector.load %arg1[%c0, %c0_0, %c0_1] : memref<2x8x32xf32, #tpu.memory_space<vmem>>, vector<2x8x32xf32>
    %1 = vector.shape_cast %0 : vector<2x8x32xf32> to vector<16x32xf32>
    %c0_2 = arith.constant 0 : index
    %c0_3 = arith.constant 0 : index
    %2 = vector.load %arg2[%c0_2, %c0_3] : memref<32x96xf32, #tpu.memory_space<vmem>>, vector<32x96xf32>
    %cst = arith.constant dense<0.000000e+00> : vector<16x96xf32>
    %3 = tpu.matmul %1, %2, %cst {dimension_numbers = #tpu.dot_dimension_numbers<[1], [0], [0], [1], [0, 0, 1, 1], [], []>} : vector<16x32xf32>, vector<32x96xf32>, vector<16x96xf32> -> vector<16x96xf32>
    %4 = vector.extract_strided_slice %3 {offsets = [0, 0], sizes = [16, 32], strides = [1, 1]} : vector<16x96xf32> to vector<16x32xf32>
    %cst_4 = arith.constant 0.353553385 : f32
    %5 = vector.broadcast %cst_4 : f32 to vector<16x32xf32>
    %6 = arith.mulf %4, %5 : vector<16x32xf32>
    %7 = vector.shape_cast %6 : vector<16x32xf32> to vector<2x8x32xf32>
    %8 = vector.extract_strided_slice %3 {offsets = [0, 32], sizes = [16, 32], strides = [1, 1]} : vector<16x96xf32> to vector<16x32xf32>
    %9 = vector.shape_cast %8 : vector<16x32xf32> to vector<2x8x32xf32>
    %10 = vector.extract_strided_slice %3 {offsets = [0, 64], sizes = [16, 32], strides = [1, 1]} : vector<16x96xf32> to vector<16x32xf32>
    %11 = vector.shape_cast %10 : vector<16x32xf32> to vector<2x8x32xf32>
    %12 = tpu.iota {dimensions = array<i32: 1>} : vector<1x8x8xi32>
    %13 = tpu.iota {dimensions = array<i32: 2>} : vector<1x8x8xi32>
    %14 = arith.cmpi sle, %13, %12 : vector<1x8x8xi32>
    %15 = vector.extract_strided_slice %7 {offsets = [0, 0, 0], sizes = [2, 8, 8], strides = [1, 1, 1]} : vector<2x8x32xf32> to vector<2x8x8xf32>
    %16 = vector.extract_strided_slice %9 {offsets = [0, 0, 0], sizes = [2, 8, 8], strides = [1, 1, 1]} : vector<2x8x32xf32> to vector<2x8x8xf32>
    %17 = vector.extract_strided_slice %11 {offsets = [0, 0, 0], sizes = [2, 8, 8], strides = [1, 1, 1]} : vector<2x8x32xf32> to vector<2x8x8xf32>
    "tpu.trace_start"() <{level = 10 : i32, message = "bqd,bkd->bqk"}> : () -> ()
    %cst_5 = arith.constant dense<0.000000e+00> : vector<2x8x8xf32>
    %18 = tpu.matmul %15, %16, %cst_5 {dimension_numbers = #tpu.dot_dimension_numbers<[2], [2], [1], [1], [0, 0, 0, 1, 1, 1], [0], [0]>} : vector<2x8x8xf32>, vector<2x8x8xf32>, vector<2x8x8xf32> -> vector<2x8x8xf32>
    %cst_6 = arith.constant -1.000000e+30 : f32
    "tpu.trace_stop"() : () -> ()
    %19 = vector.shape_cast %14 : vector<1x8x8xi1> to vector<1x8x8xi1>
    %20 = vector.broadcast %19 : vector<1x8x8xi1> to vector<2x8x8xi1>
    %21 = vector.broadcast %cst_6 : f32 to vector<2x8x8xf32>
    %22 = arith.select %20, %18, %21 : vector<2x8x8xi1>, vector<2x8x8xf32>
    %cst_7 = arith.constant dense<0xFF800000> : vector<2x8xf32>
    %23 = vector.multi_reduction <maximumf>, %22, %cst_7 [2] : vector<2x8x8xf32> to vector<2x8xf32>
    %24 = vector.shape_cast %23 : vector<2x8xf32> to vector<2x8x1xf32>
    %25 = vector.broadcast %24 : vector<2x8x1xf32> to vector<2x8x8xf32>
    %26 = arith.subf %22, %25 : vector<2x8x8xf32>
    %27 = math.exp %26 : vector<2x8x8xf32>
    %cst_8 = arith.constant dense<0.000000e+00> : vector<2x8xf32>
    %28 = vector.multi_reduction <add>, %27, %cst_8 [2] : vector<2x8x8xf32> to vector<2x8xf32>
    %29 = vector.shape_cast %28 : vector<2x8xf32> to vector<2x8x1xf32>
    %30 = vector.broadcast %29 : vector<2x8x1xf32> to vector<2x8x8xf32>
    %31 = arith.divf %27, %30 : vector<2x8x8xf32>
    %c0_9 = arith.constant 0 : index
    %c0_10 = arith.constant 0 : index
    %c0_11 = arith.constant 0 : index
    %c0_12 = arith.constant 0 : index
    %32 = vector.load %arg13[%c0_9, %c0_10, %c0_11, %c0_12] : memref<2x4x8x8xf32, #tpu.memory_space<vmem>>, vector<2x1x8x8xf32>
    %33 = vector.shape_cast %32 : vector<2x1x8x8xf32> to vector<2x8x8xf32>
    %34 = vector.shape_cast %31 : vector<2x8x8xf32> to vector<2x1x8x8xf32>
    tpu.vector_store %arg13[%c0_9, %c0_10, %c0_11, %c0_12], %34 {strides = array<i32>} : memref<2x4x8x8xf32, #tpu.memory_space<vmem>>, vector<2x1x8x8xf32>,
    "tpu.trace_start"() <{level = 10 : i32, message = "bqk,bkd->bqd"}> : () -> ()
    %cst_13 = arith.constant dense<0.000000e+00> : vector<2x8x8xf32>
    %35 = tpu.matmul %31, %17, %cst_13 {dimension_numbers = #tpu.dot_dimension_numbers<[2], [1], [1], [2], [0, 0, 0, 1, 1, 2], [0], [0]>} : vector<2x8x8xf32>, vector<2x8x8xf32>, vector<2x8x8xf32> -> vector<2x8x8xf32>
    "tpu.trace_stop"() : () -> ()
    %36 = vector.shape_cast %35 : vector<2x8x8xf32> to vector<16x8xf32>
    %c0_14 = arith.constant 0 : index
    %c0_15 = arith.constant 0 : index
    %37 = vector.load %arg14[%c0_14, %c0_15] : memref<16x32xf32, #tpu.memory_space<vmem>>, vector<16x8xf32>
    tpu.vector_store %arg14[%c0_14, %c0_15], %36 {strides = array<i32>} : memref<16x32xf32, #tpu.memory_space<vmem>>, vector<16x8xf32>,
    %38 = vector.extract_strided_slice %7 {offsets = [0, 0, 8], sizes = [2, 8, 8], strides = [1, 1, 1]} : vector<2x8x32xf32> to vector<2x8x8xf32>
    %39 = vector.extract_strided_slice %9 {offsets = [0, 0, 8], sizes = [2, 8, 8], strides = [1, 1, 1]} : vector<2x8x32xf32> to vector<2x8x8xf32>
    %40 = vector.extract_strided_slice %11 {offsets = [0, 0, 8], sizes = [2, 8, 8], strides = [1, 1, 1]} : vector<2x8x32xf32> to vector<2x8x8xf32>
    "tpu.trace_start"() <{level = 10 : i32, message = "bqd,bkd->bqk"}> : () -> ()
    %cst_16 = arith.constant dense<0.000000e+00> : vector<2x8x8xf32>
    %41 = tpu.matmul %38, %39, %cst_16 {dimension_numbers = #tpu.dot_dimension_numbers<[2], [2], [1], [1], [0, 0, 0, 1, 1, 1], [0], [0]>} : vector<2x8x8xf32>, vector<2x8x8xf32>, vector<2x8x8xf32> -> vector<2x8x8xf32>
    %cst_17 = arith.constant -1.000000e+30 : f32
    "tpu.trace_stop"() : () -> ()
    %42 = vector.shape_cast %14 : vector<1x8x8xi1> to vector<1x8x8xi1>
    %43 = vector.broadcast %42 : vector<1x8x8xi1> to vector<2x8x8xi1>
    %44 = vector.broadcast %cst_17 : f32 to vector<2x8x8xf32>
    %45 = arith.select %43, %41, %44 : vector<2x8x8xi1>, vector<2x8x8xf32>
    %cst_18 = arith.constant dense<0xFF800000> : vector<2x8xf32>
    %46 = vector.multi_reduction <maximumf>, %45, %cst_18 [2] : vector<2x8x8xf32> to vector<2x8xf32>
    %47 = vector.shape_cast %46 : vector<2x8xf32> to vector<2x8x1xf32>
    %48 = vector.broadcast %47 : vector<2x8x1xf32> to vector<2x8x8xf32>
    %49 = arith.subf %45, %48 : vector<2x8x8xf32>
    %50 = math.exp %49 : vector<2x8x8xf32>
    %cst_19 = arith.constant dense<0.000000e+00> : vector<2x8xf32>
    %51 = vector.multi_reduction <add>, %50, %cst_19 [2] : vector<2x8x8xf32> to vector<2x8xf32>
    %52 = vector.shape_cast %51 : vector<2x8xf32> to vector<2x8x1xf32>
    %53 = vector.broadcast %52 : vector<2x8x1xf32> to vector<2x8x8xf32>
    %54 = arith.divf %50, %53 : vector<2x8x8xf32>
    %c0_20 = arith.constant 0 : index
    %c1 = arith.constant 1 : index
    %c0_21 = arith.constant 0 : index
    %c0_22 = arith.constant 0 : index
    %55 = vector.load %arg13[%c0_20, %c1, %c0_21, %c0_22] : memref<2x4x8x8xf32, #tpu.memory_space<vmem>>, vector<2x1x8x8xf32>
    %56 = vector.shape_cast %55 : vector<2x1x8x8xf32> to vector<2x8x8xf32>
    %57 = vector.shape_cast %54 : vector<2x8x8xf32> to vector<2x1x8x8xf32>
    tpu.vector_store %arg13[%c0_20, %c1, %c0_21, %c0_22], %57 {strides = array<i32>} : memref<2x4x8x8xf32, #tpu.memory_space<vmem>>, vector<2x1x8x8xf32>,
    "tpu.trace_start"() <{level = 10 : i32, message = "bqk,bkd->bqd"}> : () -> ()
    %cst_23 = arith.constant dense<0.000000e+00> : vector<2x8x8xf32>
    %58 = tpu.matmul %54, %40, %cst_23 {dimension_numbers = #tpu.dot_dimension_numbers<[2], [1], [1], [2], [0, 0, 0, 1, 1, 2], [0], [0]>} : vector<2x8x8xf32>, vector<2x8x8xf32>, vector<2x8x8xf32> -> vector<2x8x8xf32>
    "tpu.trace_stop"() : () -> ()
    %59 = vector.shape_cast %58 : vector<2x8x8xf32> to vector<16x8xf32>
    %c0_24 = arith.constant 0 : index
    %c8 = arith.constant 8 : index
    %60 = vector.load %arg14[%c0_24, %c8] : memref<16x32xf32, #tpu.memory_space<vmem>>, vector<16x8xf32>
    tpu.vector_store %arg14[%c0_24, %c8], %59 {strides = array<i32>} : memref<16x32xf32, #tpu.memory_space<vmem>>, vector<16x8xf32>,
    %61 = vector.extract_strided_slice %7 {offsets = [0, 0, 16], sizes = [2, 8, 8], strides = [1, 1, 1]} : vector<2x8x32xf32> to vector<2x8x8xf32>
    %62 = vector.extract_strided_slice %9 {offsets = [0, 0, 16], sizes = [2, 8, 8], strides = [1, 1, 1]} : vector<2x8x32xf32> to vector<2x8x8xf32>
    %63 = vector.extract_strided_slice %11 {offsets = [0, 0, 16], sizes = [2, 8, 8], strides = [1, 1, 1]} : vector<2x8x32xf32> to vector<2x8x8xf32>
    "tpu.trace_start"() <{level = 10 : i32, message = "bqd,bkd->bqk"}> : () -> ()
    %cst_25 = arith.constant dense<0.000000e+00> : vector<2x8x8xf32>
    %64 = tpu.matmul %61, %62, %cst_25 {dimension_numbers = #tpu.dot_dimension_numbers<[2], [2], [1], [1], [0, 0, 0, 1, 1, 1], [0], [0]>} : vector<2x8x8xf32>, vector<2x8x8xf32>, vector<2x8x8xf32> -> vector<2x8x8xf32>
    %cst_26 = arith.constant -1.000000e+30 : f32
    "tpu.trace_stop"() : () -> ()
    %65 = vector.shape_cast %14 : vector<1x8x8xi1> to vector<1x8x8xi1>
    %66 = vector.broadcast %65 : vector<1x8x8xi1> to vector<2x8x8xi1>
    %67 = vector.broadcast %cst_26 : f32 to vector<2x8x8xf32>
    %68 = arith.select %66, %64, %67 : vector<2x8x8xi1>, vector<2x8x8xf32>
    %cst_27 = arith.constant dense<0xFF800000> : vector<2x8xf32>
    %69 = vector.multi_reduction <maximumf>, %68, %cst_27 [2] : vector<2x8x8xf32> to vector<2x8xf32>
    %70 = vector.shape_cast %69 : vector<2x8xf32> to vector<2x8x1xf32>
    %71 = vector.broadcast %70 : vector<2x8x1xf32> to vector<2x8x8xf32>
    %72 = arith.subf %68, %71 : vector<2x8x8xf32>
    %73 = math.exp %72 : vector<2x8x8xf32>
    %cst_28 = arith.constant dense<0.000000e+00> : vector<2x8xf32>
    %74 = vector.multi_reduction <add>, %73, %cst_28 [2] : vector<2x8x8xf32> to vector<2x8xf32>
    %75 = vector.shape_cast %74 : vector<2x8xf32> to vector<2x8x1xf32>
    %76 = vector.broadcast %75 : vector<2x8x1xf32> to vector<2x8x8xf32>
    %77 = arith.divf %73, %76 : vector<2x8x8xf32>
    %c0_29 = arith.constant 0 : index
    %c2 = arith.constant 2 : index
    %c0_30 = arith.constant 0 : index
    %c0_31 = arith.constant 0 : index
    %78 = vector.load %arg13[%c0_29, %c2, %c0_30, %c0_31] : memref<2x4x8x8xf32, #tpu.memory_space<vmem>>, vector<2x1x8x8xf32>
    %79 = vector.shape_cast %78 : vector<2x1x8x8xf32> to vector<2x8x8xf32>
    %80 = vector.shape_cast %77 : vector<2x8x8xf32> to vector<2x1x8x8xf32>
    tpu.vector_store %arg13[%c0_29, %c2, %c0_30, %c0_31], %80 {strides = array<i32>} : memref<2x4x8x8xf32, #tpu.memory_space<vmem>>, vector<2x1x8x8xf32>,
    "tpu.trace_start"() <{level = 10 : i32, message = "bqk,bkd->bqd"}> : () -> ()
    %cst_32 = arith.constant dense<0.000000e+00> : vector<2x8x8xf32>
    %81 = tpu.matmul %77, %63, %cst_32 {dimension_numbers = #tpu.dot_dimension_numbers<[2], [1], [1], [2], [0, 0, 0, 1, 1, 2], [0], [0]>} : vector<2x8x8xf32>, vector<2x8x8xf32>, vector<2x8x8xf32> -> vector<2x8x8xf32>
    "tpu.trace_stop"() : () -> ()
    %82 = vector.shape_cast %81 : vector<2x8x8xf32> to vector<16x8xf32>
    %c0_33 = arith.constant 0 : index
    %c16 = arith.constant 16 : index
    %83 = vector.load %arg14[%c0_33, %c16] : memref<16x32xf32, #tpu.memory_space<vmem>>, vector<16x8xf32>
    tpu.vector_store %arg14[%c0_33, %c16], %82 {strides = array<i32>} : memref<16x32xf32, #tpu.memory_space<vmem>>, vector<16x8xf32>,
    %84 = vector.extract_strided_slice %7 {offsets = [0, 0, 24], sizes = [2, 8, 8], strides = [1, 1, 1]} : vector<2x8x32xf32> to vector<2x8x8xf32>
    %85 = vector.extract_strided_slice %9 {offsets = [0, 0, 24], sizes = [2, 8, 8], strides = [1, 1, 1]} : vector<2x8x32xf32> to vector<2x8x8xf32>
    %86 = vector.extract_strided_slice %11 {offsets = [0, 0, 24], sizes = [2, 8, 8], strides = [1, 1, 1]} : vector<2x8x32xf32> to vector<2x8x8xf32>
    "tpu.trace_start"() <{level = 10 : i32, message = "bqd,bkd->bqk"}> : () -> ()
    %cst_34 = arith.constant dense<0.000000e+00> : vector<2x8x8xf32>
    %87 = tpu.matmul %84, %85, %cst_34 {dimension_numbers = #tpu.dot_dimension_numbers<[2], [2], [1], [1], [0, 0, 0, 1, 1, 1], [0], [0]>} : vector<2x8x8xf32>, vector<2x8x8xf32>, vector<2x8x8xf32> -> vector<2x8x8xf32>
    %cst_35 = arith.constant -1.000000e+30 : f32
    "tpu.trace_stop"() : () -> ()
    %88 = vector.shape_cast %14 : vector<1x8x8xi1> to vector<1x8x8xi1>
    %89 = vector.broadcast %88 : vector<1x8x8xi1> to vector<2x8x8xi1>
    %90 = vector.broadcast %cst_35 : f32 to vector<2x8x8xf32>
    %91 = arith.select %89, %87, %90 : vector<2x8x8xi1>, vector<2x8x8xf32>
    %cst_36 = arith.constant dense<0xFF800000> : vector<2x8xf32>
    %92 = vector.multi_reduction <maximumf>, %91, %cst_36 [2] : vector<2x8x8xf32> to vector<2x8xf32>
    %93 = vector.shape_cast %92 : vector<2x8xf32> to vector<2x8x1xf32>
    %94 = vector.broadcast %93 : vector<2x8x1xf32> to vector<2x8x8xf32>
    %95 = arith.subf %91, %94 : vector<2x8x8xf32>
    %96 = math.exp %95 : vector<2x8x8xf32>
    %cst_37 = arith.constant dense<0.000000e+00> : vector<2x8xf32>
    %97 = vector.multi_reduction <add>, %96, %cst_37 [2] : vector<2x8x8xf32> to vector<2x8xf32>
    %98 = vector.shape_cast %97 : vector<2x8xf32> to vector<2x8x1xf32>
    %99 = vector.broadcast %98 : vector<2x8x1xf32> to vector<2x8x8xf32>
    %100 = arith.divf %96, %99 : vector<2x8x8xf32>
    %c0_38 = arith.constant 0 : index
    %c3 = arith.constant 3 : index
    %c0_39 = arith.constant 0 : index
    %c0_40 = arith.constant 0 : index
    %101 = vector.load %arg13[%c0_38, %c3, %c0_39, %c0_40] : memref<2x4x8x8xf32, #tpu.memory_space<vmem>>, vector<2x1x8x8xf32>
    %102 = vector.shape_cast %101 : vector<2x1x8x8xf32> to vector<2x8x8xf32>
    %103 = vector.shape_cast %100 : vector<2x8x8xf32> to vector<2x1x8x8xf32>
    tpu.vector_store %arg13[%c0_38, %c3, %c0_39, %c0_40], %103 {strides = array<i32>} : memref<2x4x8x8xf32, #tpu.memory_space<vmem>>, vector<2x1x8x8xf32>,
    "tpu.trace_start"() <{level = 10 : i32, message = "bqk,bkd->bqd"}> : () -> ()
    %cst_41 = arith.constant dense<0.000000e+00> : vector<2x8x8xf32>
    %104 = tpu.matmul %100, %86, %cst_41 {dimension_numbers = #tpu.dot_dimension_numbers<[2], [1], [1], [2], [0, 0, 0, 1, 1, 2], [0], [0]>} : vector<2x8x8xf32>, vector<2x8x8xf32>, vector<2x8x8xf32> -> vector<2x8x8xf32>
    "tpu.trace_stop"() : () -> ()
    %105 = vector.shape_cast %104 : vector<2x8x8xf32> to vector<16x8xf32>
    %c0_42 = arith.constant 0 : index
    %c24 = arith.constant 24 : index
    %106 = vector.load %arg14[%c0_42, %c24] : memref<16x32xf32, #tpu.memory_space<vmem>>, vector<16x8xf32>
    tpu.vector_store %arg14[%c0_42, %c24], %105 {strides = array<i32>} : memref<16x32xf32, #tpu.memory_space<vmem>>, vector<16x8xf32>,
    %c0_43 = arith.constant 0 : index
    %c0_44 = arith.constant 0 : index
    %107 = vector.load %arg14[%c0_43, %c0_44] : memref<16x32xf32, #tpu.memory_space<vmem>>, vector<16x32xf32>
    %c0_45 = arith.constant 0 : index
    %c0_46 = arith.constant 0 : index
    %108 = vector.load %arg3[%c0_45, %c0_46] : memref<32x32xf32, #tpu.memory_space<vmem>>, vector<32x32xf32>
    %cst_47 = arith.constant dense<0.000000e+00> : vector<16x32xf32>
    %109 = tpu.matmul %107, %108, %cst_47 {dimension_numbers = #tpu.dot_dimension_numbers<[1], [0], [0], [1], [0, 0, 1, 1], [], []>} : vector<16x32xf32>, vector<32x32xf32>, vector<16x32xf32> -> vector<16x32xf32>
    %110 = arith.addf %1, %109 : vector<16x32xf32>
    %cst_48 = arith.constant dense<0.000000e+00> : vector<16xf32>
    %111 = vector.multi_reduction <add>, %110, %cst_48 [1] : vector<16x32xf32> to vector<16xf32>
    %112 = vector.shape_cast %111 : vector<16xf32> to vector<16x1xf32>
    %cst_49 = arith.constant 3.200000e+01 : f32
    %113 = vector.broadcast %cst_49 : f32 to vector<16x1xf32>
    %114 = arith.divf %112, %113 : vector<16x1xf32>
    %115 = vector.broadcast %114 : vector<16x1xf32> to vector<16x32xf32>
    %116 = arith.subf %110, %115 : vector<16x32xf32>
    %117 = arith.mulf %116, %116 : vector<16x32xf32>
    %cst_50 = arith.constant dense<0.000000e+00> : vector<16xf32>
    %118 = vector.multi_reduction <add>, %117, %cst_50 [1] : vector<16x32xf32> to vector<16xf32>
    %119 = vector.shape_cast %118 : vector<16xf32> to vector<16x1xf32>
    %cst_51 = arith.constant 3.200000e+01 : f32
    %120 = vector.broadcast %cst_51 : f32 to vector<16x1xf32>
    %121 = arith.divf %119, %120 : vector<16x1xf32>
    %122 = vector.broadcast %114 : vector<16x1xf32> to vector<16x32xf32>
    %123 = arith.subf %110, %122 : vector<16x32xf32>
    %cst_52 = arith.constant 9.99999974E-6 : f32
    %124 = vector.broadcast %cst_52 : f32 to vector<16x1xf32>
    %125 = arith.addf %121, %124 : vector<16x1xf32>
    %126 = math.rsqrt %125 : vector<16x1xf32>
    %127 = vector.broadcast %126 : vector<16x1xf32> to vector<16x32xf32>
    %128 = arith.mulf %123, %127 : vector<16x32xf32>
    %c0_53 = arith.constant 0 : index
    %c0_54 = arith.constant 0 : index
    %129 = vector.load %arg8[%c0_53, %c0_54] : memref<1x32xf32, #tpu.memory_space<vmem>>, vector<1x32xf32>
    %130 = vector.broadcast %129 : vector<1x32xf32> to vector<16x32xf32>
    %131 = arith.mulf %128, %130 : vector<16x32xf32>
    %c0_55 = arith.constant 0 : index
    %c0_56 = arith.constant 0 : index
    %132 = vector.load %arg9[%c0_55, %c0_56] : memref<1x32xf32, #tpu.memory_space<vmem>>, vector<1x32xf32>
    %133 = vector.broadcast %132 : vector<1x32xf32> to vector<16x32xf32>
    %134 = arith.addf %131, %133 : vector<16x32xf32>
    %c0_57 = arith.constant 0 : index
    %c0_58 = arith.constant 0 : index
    %135 = vector.load %arg4[%c0_57, %c0_58] : memref<32x64xf32, #tpu.memory_space<vmem>>, vector<32x64xf32>
    %cst_59 = arith.constant dense<0.000000e+00> : vector<16x64xf32>
    %136 = tpu.matmul %134, %135, %cst_59 {dimension_numbers = #tpu.dot_dimension_numbers<[1], [0], [0], [1], [0, 0, 1, 1], [], []>} : vector<16x32xf32>, vector<32x64xf32>, vector<16x64xf32> -> vector<16x64xf32>
    %c0_60 = arith.constant 0 : index
    %c0_61 = arith.constant 0 : index
    %137 = vector.load %arg5[%c0_60, %c0_61] : memref<1x64xf32, #tpu.memory_space<vmem>>, vector<1x64xf32>
    %138 = vector.broadcast %137 : vector<1x64xf32> to vector<16x64xf32>
    %139 = arith.addf %136, %138 : vector<16x64xf32>
    %cst_62 = arith.constant 0.000000e+00 : f32
    %140 = vector.broadcast %cst_62 : f32 to vector<16x64xf32>
    %141 = arith.maximumf %139, %140 : vector<16x64xf32>
    %c0_63 = arith.constant 0 : index
    %c0_64 = arith.constant 0 : index
    %142 = vector.load %arg6[%c0_63, %c0_64] : memref<64x32xf32, #tpu.memory_space<vmem>>, vector<64x32xf32>
    %cst_65 = arith.constant dense<0.000000e+00> : vector<16x32xf32>
    %143 = tpu.matmul %141, %142, %cst_65 {dimension_numbers = #tpu.dot_dimension_numbers<[1], [0], [0], [1], [0, 0, 1, 1], [], []>} : vector<16x64xf32>, vector<64x32xf32>, vector<16x32xf32> -> vector<16x32xf32>
    %c0_66 = arith.constant 0 : index
    %c0_67 = arith.constant 0 : index
    %144 = vector.load %arg7[%c0_66, %c0_67] : memref<1x32xf32, #tpu.memory_space<vmem>>, vector<1x32xf32>
    %145 = vector.broadcast %144 : vector<1x32xf32> to vector<16x32xf32>
    %146 = arith.addf %143, %145 : vector<16x32xf32>
    %147 = arith.addf %134, %146 : vector<16x32xf32>
    %cst_68 = arith.constant dense<0.000000e+00> : vector<16xf32>
    %148 = vector.multi_reduction <add>, %147, %cst_68 [1] : vector<16x32xf32> to vector<16xf32>
    %149 = vector.shape_cast %148 : vector<16xf32> to vector<16x1xf32>
    %cst_69 = arith.constant 3.200000e+01 : f32
    %150 = vector.broadcast %cst_69 : f32 to vector<16x1xf32>
    %151 = arith.divf %149, %150 : vector<16x1xf32>
    %152 = vector.broadcast %151 : vector<16x1xf32> to vector<16x32xf32>
    %153 = arith.subf %147, %152 : vector<16x32xf32>
    %154 = arith.mulf %153, %153 : vector<16x32xf32>
    %cst_70 = arith.constant dense<0.000000e+00> : vector<16xf32>
    %155 = vector.multi_reduction <add>, %154, %cst_70 [1] : vector<16x32xf32> to vector<16xf32>
    %156 = vector.shape_cast %155 : vector<16xf32> to vector<16x1xf32>
    %cst_71 = arith.constant 3.200000e+01 : f32
    %157 = vector.broadcast %cst_71 : f32 to vector<16x1xf32>
    %158 = arith.divf %156, %157 : vector<16x1xf32>
    %159 = vector.broadcast %151 : vector<16x1xf32> to vector<16x32xf32>
    %160 = arith.subf %147, %159 : vector<16x32xf32>
    %cst_72 = arith.constant 9.99999974E-6 : f32
    %161 = vector.broadcast %cst_72 : f32 to vector<16x1xf32>
    %162 = arith.addf %158, %161 : vector<16x1xf32>
    %163 = math.rsqrt %162 : vector<16x1xf32>
    %164 = vector.broadcast %163 : vector<16x1xf32> to vector<16x32xf32>
    %165 = arith.mulf %160, %164 : vector<16x32xf32>
    %c0_73 = arith.constant 0 : index
    %c0_74 = arith.constant 0 : index
    %166 = vector.load %arg10[%c0_73, %c0_74] : memref<1x32xf32, #tpu.memory_space<vmem>>, vector<1x32xf32>
    %167 = vector.broadcast %166 : vector<1x32xf32> to vector<16x32xf32>
    %168 = arith.mulf %165, %167 : vector<16x32xf32>
    %c0_75 = arith.constant 0 : index
    %c0_76 = arith.constant 0 : index
    %169 = vector.load %arg11[%c0_75, %c0_76] : memref<1x32xf32, #tpu.memory_space<vmem>>, vector<1x32xf32>
    %170 = vector.broadcast %169 : vector<1x32xf32> to vector<16x32xf32>
    %171 = arith.addf %168, %170 : vector<16x32xf32>
    %c0_77 = arith.constant 0 : index
    %c0_78 = arith.constant 0 : index
    %172 = vector.load %arg12[%c0_77, %c0_78] : memref<16x32xf32, #tpu.memory_space<vmem>>, vector<16x32xf32>
    tpu.vector_store %arg12[%c0_77, %c0_78], %171 {strides = array<i32>} : memref<16x32xf32, #tpu.memory_space<vmem>>, vector<16x32xf32>,
    return
  }
  func.func @transform_0(%arg0: i32) -> (i32, i32, i32) {
    %c0_i32 = arith.constant 0 : i32
    %c0_i32_0 = arith.constant 0 : i32
    %c0_i32_1 = arith.constant 0 : i32
    return %arg0, %c0_i32, %c0_i32_0 : i32, i32, i32
  }
  func.func @transform_1(%arg0: i32) -> (i32, i32) {
    %c0_i32 = arith.constant 0 : i32
    %c0_i32_0 = arith.constant 0 : i32
    %c0_i32_1 = arith.constant 0 : i32
    return %c0_i32, %c0_i32_0 : i32, i32
  }
  func.func @transform_2(%arg0: i32) -> (i32, i32) {
    %c0_i32 = arith.constant 0 : i32
    %c0_i32_0 = arith.constant 0 : i32
    %c0_i32_1 = arith.constant 0 : i32
    return %c0_i32, %c0_i32_0 : i32, i32
  }
  func.func @transform_3(%arg0: i32) -> (i32, i32) {
    %c0_i32 = arith.constant 0 : i32
    %c0_i32_0 = arith.constant 0 : i32
    %c0_i32_1 = arith.constant 0 : i32
    return %c0_i32, %c0_i32_0 : i32, i32
  }
  func.func @transform_4(%arg0: i32) -> (i32, i32) {
    %c0_i32 = arith.constant 0 : i32
    %c0_i32_0 = arith.constant 0 : i32
    %c0_i32_1 = arith.constant 0 : i32
    return %c0_i32, %c0_i32_0 : i32, i32
  }
  func.func @transform_5(%arg0: i32) -> (i32, i32) {
    %c0_i32 = arith.constant 0 : i32
    %c0_i32_0 = arith.constant 0 : i32
    %c0_i32_1 = arith.constant 0 : i32
    return %c0_i32, %c0_i32_0 : i32, i32
  }
  func.func @transform_6(%arg0: i32) -> (i32, i32) {
    %c0_i32 = arith.constant 0 : i32
    %c0_i32_0 = arith.constant 0 : i32
    %c0_i32_1 = arith.constant 0 : i32
    return %c0_i32, %c0_i32_0 : i32, i32
  }
  func.func @transform_7(%arg0: i32) -> (i32, i32) {
    %c0_i32 = arith.constant 0 : i32
    %c0_i32_0 = arith.constant 0 : i32
    %c0_i32_1 = arith.constant 0 : i32
    return %c0_i32, %c0_i32_0 : i32, i32
  }
  func.func @transform_8(%arg0: i32) -> (i32, i32) {
    %c0_i32 = arith.constant 0 : i32
    %c0_i32_0 = arith.constant 0 : i32
    %c0_i32_1 = arith.constant 0 : i32
    return %c0_i32, %c0_i32_0 : i32, i32
  }
  func.func @transform_9(%arg0: i32) -> (i32, i32) {
    %c0_i32 = arith.constant 0 : i32
    %c0_i32_0 = arith.constant 0 : i32
    %c0_i32_1 = arith.constant 0 : i32
    return %c0_i32, %c0_i32_0 : i32, i32
  }
  func.func @transform_10(%arg0: i32) -> (i32, i32) {
    %c0_i32 = arith.constant 0 : i32
    %c0_i32_0 = arith.constant 0 : i32
    %c0_i32_1 = arith.constant 0 : i32
    return %c0_i32, %c0_i32_0 : i32, i32
  }
  func.func @transform_11(%arg0: i32) -> (i32, i32) {
    %c0_i32 = arith.constant 0 : i32
    %c0_i32_0 = arith.constant 0 : i32
    return %arg0, %c0_i32 : i32, i32
  }
  func.func @transform_12(%arg0: i32) -> (i32, i32, i32, i32) {
    %c0_i32 = arith.constant 0 : i32
    %c0_i32_0 = arith.constant 0 : i32
    %c0_i32_1 = arith.constant 0 : i32
    %c0_i32_2 = arith.constant 0 : i32
    return %arg0, %c0_i32, %c0_i32_0, %c0_i32_1 : i32, i32, i32, i32
  }
}

</mosaic_0001>

<bundles_post_ra>
// kernel: tpu_custom_call.1
= control target key start
LH: loop header
LB: loop body
LE: loop exit
PB: predicated region body
PF: predicated region fallthrough
CT: control target
= control target key end

     0   :  { %18 = vsyncpa [#allocation4], 0  ;;  %s2730_s0 = inlined_call_operand.hbm [shape: f32[2,8,32], index: 0, kind: input, shape index: {}]   ;;  %s2731_s1 = inlined_call_operand.vmem [shape: f32[32,96], index: 1, kind: input, shape index: {}]   ;;  %s2732_s2 = inlined_call_operand.vmem [shape: f32[32,32], index: 2, kind: input, shape index: {}]   ;;  %s2733_s3 = inlined_call_operand.vmem [shape: f32[32,64], index: 3, kind: input, shape index: {}]   ;;  %s2734_s4 = inlined_call_operand.vmem [shape: f32[1,64], index: 4, kind: input, shape index: {}]   ;;  %s2735_s5 = inlined_call_operand.vmem [shape: f32[64,32], index: 5, kind: input, shape index: {}]   ;;  %s2736_s6 = inlined_call_operand.vmem [shape: f32[1,32], index: 6, kind: input, shape index: {}]   ;;  %s2737_s7 = inlined_call_operand.vmem [shape: f32[1,32], index: 7, kind: input, shape index: {}]   ;;  %s2738_s8 = inlined_call_operand.vmem [shape: f32[1,32], index: 8, kind: input, shape index: {}]   ;;  %s2739_s9 = inlined_call_operand.vmem [shape: f32[1,32], index: 9, kind: input, shape index: {}]   ;;  %s2740_s10 = inlined_call_operand.vmem [shape: f32[1,32], index: 10, kind: input, shape index: {}]   ;;  %s2741_s11 = inlined_call_operand.hbm [shape: f32[16,32], index: 11, kind: output, shape index: {0}]   ;;  %s2742_s12 = inlined_call_operand.hbm [shape: f32[2,4,8,8], index: 12, kind: output, shape index: {1}]  }
   0x1   :  { %19 = vsyncpa [#allocation5], 0 }
   0x2   :  { %20 = vsyncpa [#allocation8], 0  ;;  %s2336_s21 = smov [#allocation3]   ;;  %s2264_s25 = scalar_lea.hbm %s2730_s0, 256 }
   0x3   :  { %s26_s22 = sshll.u32 %s2336_s21, 4  ;;  %p2265_p0 = scmp.ne.s32.totalorder %s2730_s0, %s2264_s25  ;;  %s27_s22 = int_to_ptr.vmem [resolvable:$true] %s26_s22 }
   0x4   :  { %p2268_p1 = scmp.lt.u32.totalorder %s2264_s25, %s2730_s0 }
   0x6   :  { %p2270_p2 = pnand %p2268_p1, %p2265_p0 }
   0x8   :  { %2273 = shalt.err (!%p2270_p2)
}
   0x9   :  { %s2274_s30 = scalar_lea.vmem %s27_s22, 256  ;;  %p2279_p4 = scmp.lt.s32.totalorder %s27_s22, %s27_s22 }
   0xa   :  { %p2275_p3 = scmp.ne.s32.totalorder %s27_s22, %s2274_s30  ;;  %p2280_p5 = scmp.lt.s32.totalorder %s2274_s30, %s2274_s30 }
   0xc   :  { %p2281_p6 = por %p2280_p5, %p2279_p4 }
   0xe   :  { %p2282_p7 = pnand %p2281_p6, %p2275_p3 }
  0x10   :  { %2285 = shalt.err (!%p2282_p7)
}
  0x11   :  { %s2337_s13 = smov 128   ;;  %s2338_s14 = smov 8  }
  0x12   :  { %32 = dma.hbm_to_vmem [thread:$0]  %s2730_s0, 256, %s27_s22, [#allocation4], %s2337_s13, %s2337_s13, %s2338_s14  }
  0x13   :  { %2330 = dma.done.wait [#allocation4], 256  }
  0x14   :  { %2331 = vsyncadd [#allocation4], 4294967040  ;;  %vm62_vm0 = vcmask 261120   ;;  %v58_v0 = vld [vmem:[%s2731_s1] sm:$0xff]  ;;  %v59_v1 = vld [vmem:[%s2731_s1 + $0x8] sm:$0xff]  ;;  %v2339_v8 = vmov 0.0   ;;  %v146_v15 = vlaneseq }
  0x15   :  { %v60_v2 = vld [vmem:[%s2731_s1 + $0x10] sm:$0xff]  ;;  %v2164_v3 = vpack.c.bf16 %v59_v1, %v58_v0  ;;  %v61_v4 = vld [vmem:[%s2731_s1 + $0x18] sm:$0xff]  ;;  %2053 = vmatprep.subr.mxu0 %v2339_v8  ;;  %vm2340_vm1 = vmmov 0   ;;  %s2341_s0 = smov 96   ;;  %vm154_vm2 = vcmask 64512   ;;  %s2342_s1 = smov 64  }
  0x16   :  { %v2448_v5 = vld [vmem:[#allocation3] sm:$0xff]  ;;  %v2168_v6 = vpack.c.bf16 %v61_v4, %v60_v2  ;;  %v2452_v7 = vld [vmem:[#allocation3 + $0x8] sm:$0xff]  ;;  %2055 = vmatprep.mubr.msk.f32.mxu0 %vm2340_vm1, %v2339_v8  ;;  %v147_v16 = vshrl.u32 %v146_v15, 7  ;;  %v149_v17 = vand.u32 127, %v146_v15  ;;  %s2343_s22 = smov 88   ;;  %s2344_s26 = smov 120  }
  0x17   :  { %2040 = vmatprep.mubr.msk.f32.mxu1 %vm62_vm0, %v2448_v5  ;;  %2165 = vmatprep.subr.bf16.mxu1 %v2164_v3  ;;  %s2345_s27 = smov 56   ;;  %s2346_s28 = smov 80   ;;  %vm833_vm4 = vcmask 130112   ;;  %vm1179_vm5 = vcmask 195712   ;;  %vm1525_vm6 = vcmask 261312   ;;  %vm1771_vm7 = vcmask 523264  }
  0x18   :  { %2167 = vmatpush3.bf16.msra.mxu1 %v2164_v3  ;;  %vm2486_vm3 = vcmp.le.s32.totalorder %v149_v17, %v147_v16  ;;  %s2347_s29 = smov 112   ;;  %s2348_s30 = smov 48  }
  0x19   :  { %2169 = vmatprep.subr.bf16.mxu1 %v2168_v6  ;;  %s2349_s15 = smov 72   ;;  %s2350_s16 = smov 104  }
  0x1a   :  { %s2351_s17 = smov 40   ;;  %s2352_s18 = smov 16  }
  0x1c   :  { %2171 = vmatpush3.bf16.msra.mxu1 %v2168_v6 }
  0x1d   :  { %2043 = vmatprep.subr.mxu1 %v2339_v8 }
  0x1f   :  { %2041 = vmatmul.mubr.msk.f32.vlgmr.msra.gmra.mrb[0].mxu1 %vm62_vm0, %v2452_v7 }
  0x20   :  { %2045 = vmatprep.mubr.msk.f32.mxu1 %vm2340_vm1, %v2339_v8 }
  0xf2   :  { %v2462_v9 = vpop.f32.mrb[0].mxu1 }
  0xf3   :  { %v2464_v10 = vpop.f32.mrb[1].mxu1  ;;  %v2479_v14 = vmul.f32 0.35355338, %v2462_v9 }
  0xf4   :  { %152 = vrot.lane.b32.xlu0 %v2464_v10, %s2341_s0  ;;  %v2471_v12 = vmul.f32 0.35355338, %v2464_v10 }
  0xf8   :  { %231 = vrot.lane.b32.xlu0 %v2462_v9, %s2341_s0 }
 0x166   :  { %v153_v11 = vpop.permute.xlu0 %152 }
 0x167   :  { %2044 = vmatpush3.xpose.msk.msra.mxu1 %vm154_vm2, %v153_v11 }
 0x168   :  { %2048 = vmatprep.subr.mxu1 %v2339_v8 }
 0x16a   :  { %v232_v13 = vpop.permute.xlu0 %231  ;;  %2046 = vmatmul.mubr.msk.f32.vlgmr.msra.gmra.mrb[2].mxu1 %vm154_vm2, %v2471_v12 }
 0x16b   :  { %2049 = vmatpush3.xpose.msk.msra.mxu1 %vm154_vm2, %v232_v13  ;;  %2050 = vmatprep.mubr.msk.f32.mxu1 %vm2340_vm1, %v2339_v8 }
 0x16c   :  { %2058 = vmatprep.subr.mxu1 %v2339_v8 }
 0x16e   :  { %2051 = vmatmul.mubr.msk.f32.vlgmr.msra.gmra.mrb[4].mxu1 %vm154_vm2, %v2479_v14 }
 0x16f   :  { %2060 = vmatprep.mubr.msk.f32.mxu1 %vm2340_vm1, %v2339_v8 }
 0x23d   :  { %v226_v19 = vpop.f32.mrb[2].mxu1 }
 0x23e   :  { %v310_v20 = vsel %vm2486_vm3, %v226_v19, -1e+30  ;;  %v2047_v21 = vpop.f32.mrb[3].mxu1 }
 0x23f   :  { %v312_v22 = vsel %vm154_vm2, %v310_v20, -inf }
 0x240   :  { %313 = vmax.xlane.f32.xlu1 %v312_v22 }
 0x241   :  { %v304_v23 = vpop.f32.mrb[4].mxu1 }
 0x242   :  { %v311_v24 = vsel %vm2486_vm3, %v304_v23, -1e+30  ;;  %v2052_v25 = vpop.f32.mrb[5].mxu1 }
 0x243   :  { %v315_v26 = vsel %vm154_vm2, %v311_v24, -inf }
 0x244   :  { %316 = vmax.xlane.f32.xlu1 %v315_v26 }
 0x255   :  { %336 = vrot.lane.b32.xlu1 %v2464_v10, %s2342_s1 }
 0x259   :  { %412 = vrot.lane.b32.xlu1 %v2462_v9, %s2342_s1 }
 0x25d   :  { %492 = vrot.lane.b32.xlu1 %v2464_v10, %s2343_s22 }
 0x261   :  { %570 = vrot.lane.b32.xlu1 %v2462_v9, %s2343_s22  ;;  %s2353_s22 = smov 24  }
 0x2cd   :  { %v314_v27 = vpop.xlane.xlu1 %313 }
 0x2ce   :  { %v318_v28 = vsub.f32 %v310_v20, %v314_v27 }
 0x2d0   :  { %v320_v29 = vmul.f32 1.442695, %v318_v28 }
 0x2d1   :  { %v317_v30 = vpop.xlane.xlu1 %316 }
 0x2d2   :  { %2224 = vpow2.f32 %v320_v29  ;;  %v319_v31 = vsub.f32 %v311_v24, %v317_v30 }
 0x2d4   :  { %v322_v32 = vmul.f32 1.442695, %v319_v31 }
 0x2d5   :  { %v337_v33 = vpop.permute.xlu1 %336 }
 0x2d6   :  { %2226 = vpow2.f32 %v322_v32  ;;  %2054 = vmatpush3.msra.mxu0 %v337_v33 }
 0x2d7   :  { %2063 = vmatprep.subr.mxu0 %v2339_v8 }
 0x2d9   :  { %v413_v34 = vpop.permute.xlu1 %412 }
 0x2da   :  { %2059 = vmatpush3.msra.mxu1 %v413_v34 }
 0x2db   :  { %2068 = vmatprep.subr.mxu1 %v2339_v8 }
 0x2dc   :  { %v2225_v35 = vpop.eup %2224 }
 0x2dd   :  { %v324_v36 = vsel %vm154_vm2, %v2225_v35, 0.0  ;;  %v493_v39 = vpop.permute.xlu1 %492 }
 0x2de   :  { %325 = vadd.xlane.f32.xlu0 %v324_v36 }
 0x2e0   :  { %v2227_v37 = vpop.eup %2226 }
 0x2e1   :  { %v327_v38 = vsel %vm154_vm2, %v2227_v37, 0.0  ;;  %v571_v40 = vpop.permute.xlu1 %570 }
 0x2e2   :  { %328 = vadd.xlane.f32.xlu1 %v327_v38 }
 0x2f3   :  { %568 = vrot.lane.b32.xlu1 %v2479_v14, %s2344_s26 }
 0x2f4   :  { %490 = vrot.lane.b32.xlu0 %v2471_v12, %s2344_s26 }
 0x36b   :  { %v326_v41 = vpop.xlane.xlu0 %325 }
 0x36c   :  { %2228 = vrcp.f32 %v326_v41 }
 0x36f   :  { %v329_v42 = vpop.xlane.xlu1 %328  ;;  %v491_v47 = vpop.permute.xlu0 %490 }
 0x370   :  { %2230 = vrcp.f32 %v329_v42 }
 0x373   :  { %v569_v48 = vpop.permute.xlu1 %568 }
 0x376   :  { %v2229_v43 = vpop.eup %2228 }
 0x377   :  { %v331_v44 = vmul.f32 %v2229_v43, %v2225_v35 }
 0x379   :  { %334 = vst.msk [vmem:[#allocation7] sm:$0xff] %vm154_vm2, %v331_v44  ;;  %2056 = vmatmul.mubr.msk.f32.vlgmr.msra.gmra.mrb[0].mxu0 %vm154_vm2, %v331_v44 }
 0x37a   :  { %v2231_v45 = vpop.eup %2230  ;;  %2064 = vmatpush3.xpose.msk.msra.mxu0 %vm154_vm2, %v493_v39  ;;  %2065 = vmatprep.mubr.msk.f32.mxu0 %vm2340_vm1, %v2339_v8 }
 0x37b   :  { %v333_v46 = vmul.f32 %v2231_v45, %v2227_v37  ;;  %2073 = vmatprep.subr.mxu0 %v2339_v8 }
 0x37d   :  { %335 = vst.msk [vmem:[#allocation7 + $0x20] sm:$0xff] %vm154_vm2, %v333_v46  ;;  %2061 = vmatmul.mubr.msk.f32.vlgmr.msra.gmra.mrb[6].mxu1 %vm154_vm2, %v333_v46  ;;  %2066 = vmatmul.mubr.msk.f32.vlgmr.msra.gmra.mrb[2].mxu0 %vm154_vm2, %v491_v47 }
 0x37e   :  { %2069 = vmatpush3.xpose.msk.msra.mxu1 %vm154_vm2, %v571_v40  ;;  %2070 = vmatprep.mubr.msk.f32.mxu1 %vm2340_vm1, %v2339_v8 }
 0x37f   :  { %2078 = vmatprep.subr.mxu1 %v2339_v8  ;;  %2075 = vmatprep.mubr.msk.f32.mxu0 %vm2340_vm1, %v2339_v8 }
 0x381   :  { %2071 = vmatmul.mubr.msk.f32.vlgmr.msra.gmra.mrb[8].mxu1 %vm154_vm2, %v569_v48 }
 0x382   :  { %2080 = vmatprep.mubr.msk.f32.mxu1 %vm2340_vm1, %v2339_v8 }
 0x44c   :  { %v408_v49 = vpop.f32.mrb[0].mxu0 }
 0x44d   :  { %488 = vst.msk [vmem:[#allocation2] sm:$0xff] %vm154_vm2, %v408_v49  ;;  %v2057_v50 = vpop.f32.mrb[1].mxu0 }
 0x450   :  { %v484_v51 = vpop.f32.mrb[6].mxu1  ;;  %v564_v52 = vpop.f32.mrb[2].mxu0 }
 0x451   :  { %489 = vst.msk [vmem:[#allocation2 + $0x8] sm:$0xff] %vm154_vm2, %v484_v51  ;;  %v646_v53 = vsel %vm2486_vm3, %v564_v52, -1e+30  ;;  %v2062_v54 = vpop.f32.mrb[7].mxu1  ;;  %v2067_v55 = vpop.f32.mrb[3].mxu0 }
 0x452   :  { %v648_v56 = vsel %vm154_vm2, %v646_v53, -inf }
 0x453   :  { %649 = vmax.xlane.f32.xlu1 %v648_v56 }
 0x454   :  { %v642_v57 = vpop.f32.mrb[8].mxu1 }
 0x455   :  { %v647_v58 = vsel %vm2486_vm3, %v642_v57, -1e+30  ;;  %v2072_v59 = vpop.f32.mrb[9].mxu1 }
 0x456   :  { %v651_v60 = vsel %vm154_vm2, %v647_v58, -inf }
 0x457   :  { %652 = vmax.xlane.f32.xlu0 %v651_v60 }
 0x464   :  { %673 = vrot.lane.b32.xlu1 %v2464_v10, %s2345_s27 }
 0x468   :  { %838 = vrot.lane.b32.xlu1 %v2464_v10, %s2346_s28 }
 0x46c   :  { %916 = vrot.lane.b32.xlu1 %v2462_v9, %s2346_s28 }
 0x46d   :  { %749 = vrot.lane.b32.xlu0 %v2462_v9, %s2345_s27 }
 0x471   :  { %836 = vrot.lane.b32.xlu0 %v2471_v12, %s2347_s29 }
 0x4e0   :  { %v650_v61 = vpop.xlane.xlu1 %649 }
 0x4e1   :  { %v654_v62 = vsub.f32 %v646_v53, %v650_v61 }
 0x4e3   :  { %v656_v63 = vmul.f32 1.442695, %v654_v62 }
 0x4e4   :  { %v674_v0 = vpop.permute.xlu1 %673  ;;  %v653_v1 = vpop.xlane.xlu0 %652 }
 0x4e5   :  { %2232 = vpow2.f32 %v656_v63  ;;  %v655_v2 = vsub.f32 %v647_v58, %v653_v1  ;;  %2074 = vmatpush3.msra.mxu0 %v674_v0 }
 0x4e6   :  { %2083 = vmatprep.subr.mxu0 %v2339_v8 }
 0x4e7   :  { %v658_v3 = vmul.f32 1.442695, %v655_v2 }
 0x4e8   :  { %v750_v4 = vpop.permute.xlu0 %749  ;;  %v839_v16 = vpop.permute.xlu1 %838 }
 0x4e9   :  { %2234 = vpow2.f32 %v658_v3  ;;  %2079 = vmatpush3.msra.mxu1 %v750_v4 }
 0x4ea   :  { %2088 = vmatprep.subr.mxu1 %v2339_v8 }
 0x4ec   :  { %v917_v17 = vpop.permute.xlu1 %916  ;;  %v837_v25 = vpop.permute.xlu0 %836 }
 0x4ef   :  { %v2233_v6 = vpop.eup %2232 }
 0x4f0   :  { %v660_v11 = vsel %vm154_vm2, %v2233_v6, 0.0 }
 0x4f1   :  { %661 = vadd.xlane.f32.xlu1 %v660_v11 }
 0x4f3   :  { %v2235_v13 = vpop.eup %2234 }
 0x4f4   :  { %v663_v15 = vsel %vm154_vm2, %v2235_v13, 0.0 }
 0x4f5   :  { %664 = vadd.xlane.f32.xlu1 %v663_v15 }
 0x506   :  { %914 = vrot.lane.b32.xlu1 %v2479_v14, %s2347_s29 }
 0x57e   :  { %v662_v19 = vpop.xlane.xlu1 %661 }
 0x57f   :  { %2236 = vrcp.f32 %v662_v19 }
 0x582   :  { %v665_v20 = vpop.xlane.xlu1 %664 }
 0x583   :  { %2238 = vrcp.f32 %v665_v20 }
 0x586   :  { %v915_v26 = vpop.permute.xlu1 %914 }
 0x589   :  { %v2237_v21 = vpop.eup %2236 }
 0x58a   :  { %v667_v22 = vmul.f32 %v2237_v21, %v2233_v6 }
 0x58c   :  { %671 = vst.msk [vmem:[#allocation7 + $0x8] sm:$0xff] %vm154_vm2, %v667_v22  ;;  %2076 = vmatmul.mubr.msk.f32.vlgmr.msra.gmra.mrb[4].mxu0 %vm154_vm2, %v667_v22 }
 0x58d   :  { %v2239_v23 = vpop.eup %2238  ;;  %2084 = vmatpush3.xpose.msk.msra.mxu0 %vm154_vm2, %v839_v16  ;;  %2085 = vmatprep.mubr.msk.f32.mxu0 %vm2340_vm1, %v2339_v8 }
 0x58e   :  { %v669_v24 = vmul.f32 %v2239_v23, %v2235_v13  ;;  %2093 = vmatprep.subr.mxu0 %v2339_v8 }
 0x590   :  { %672 = vst.msk [vmem:[#allocation7 + $0x28] sm:$0xff] %vm154_vm2, %v669_v24  ;;  %2081 = vmatmul.mubr.msk.f32.vlgmr.msra.gmra.mrb[10].mxu1 %vm154_vm2, %v669_v24  ;;  %2086 = vmatmul.mubr.msk.f32.vlgmr.msra.gmra.mrb[6].mxu0 %vm154_vm2, %v837_v25 }
 0x591   :  { %2089 = vmatpush3.xpose.msk.msra.mxu1 %vm154_vm2, %v917_v17  ;;  %2090 = vmatprep.mubr.msk.f32.mxu1 %vm2340_vm1, %v2339_v8 }
 0x592   :  { %2098 = vmatprep.subr.mxu1 %v2339_v8  ;;  %2095 = vmatprep.mubr.msk.f32.mxu0 %vm2340_vm1, %v2339_v8 }
 0x594   :  { %2091 = vmatmul.mubr.msk.f32.vlgmr.msra.gmra.mrb[12].mxu1 %vm154_vm2, %v915_v26 }
 0x595   :  { %2100 = vmatprep.mubr.msk.f32.mxu1 %vm2340_vm1, %v2339_v8 }
 0x65f   :  { %v2560_v27 = vpop.f32.mrb[4].mxu0 }
 0x660   :  { %v2077_v28 = vpop.f32.mrb[5].mxu0 }
 0x663   :  { %v2562_v29 = vpop.f32.mrb[10].mxu1  ;;  %v910_v30 = vpop.f32.mrb[6].mxu0 }
 0x664   :  { %v992_v31 = vsel %vm2486_vm3, %v910_v30, -1e+30  ;;  %v2082_v32 = vpop.f32.mrb[11].mxu1  ;;  %v2087_v33 = vpop.f32.mrb[7].mxu0 }
 0x665   :  { %v994_v34 = vsel %vm154_vm2, %v992_v31, -inf }
 0x666   :  { %995 = vmax.xlane.f32.xlu0 %v994_v34  ;;  %v1531_v34 = vld [vmem:[%s2732_s2 + $0x8] sm:$0xff] }
 0x667   :  { %v988_v35 = vpop.f32.mrb[12].mxu1 }
 0x668   :  { %v993_v36 = vsel %vm2486_vm3, %v988_v35, -1e+30  ;;  %v2092_v37 = vpop.f32.mrb[13].mxu1 }
 0x669   :  { %v997_v38 = vsel %vm154_vm2, %v993_v36, -inf  ;;  %v1533_v37 = vld [vmem:[%s2732_s2 + $0x18] sm:$0xff] }
 0x66a   :  { %998 = vmax.xlane.f32.xlu1 %v997_v38 }
 0x67b   :  { %1019 = vrot.lane.b32.xlu1 %v2464_v10, %s2348_s30 }
 0x67c   :  { %1095 = vrot.lane.b32.xlu0 %v2462_v9, %s2348_s30 }
 0x67f   :  { %1184 = vrot.lane.b32.xlu1 %v2464_v10, %s2349_s15 }
 0x683   :  { %1262 = vrot.lane.b32.xlu1 %v2462_v9, %s2349_s15 }
 0x687   :  { %1260 = vrot.lane.b32.xlu1 %v2479_v14, %s2350_s16 }
 0x6f3   :  { %v996_v39 = vpop.xlane.xlu0 %995 }
 0x6f4   :  { %v1000_v40 = vsub.f32 %v992_v31, %v996_v39 }
 0x6f6   :  { %v1002_v41 = vmul.f32 1.442695, %v1000_v40 }
 0x6f7   :  { %v1096_v42 = vpop.permute.xlu0 %1095  ;;  %v999_v43 = vpop.xlane.xlu1 %998 }
 0x6f8   :  { %2240 = vpow2.f32 %v1002_v41  ;;  %v1001_v44 = vsub.f32 %v993_v36, %v999_v43  ;;  %2099 = vmatpush3.msra.mxu1 %v1096_v42  ;;  %v1532_v36 = vld [vmem:[%s2732_s2 + $0x10] sm:$0xff] }
 0x6f9   :  { %2108 = vmatprep.subr.mxu1 %v2339_v8  ;;  %v2176_v38 = vpack.c.bf16 %v1533_v37, %v1532_v36 }
 0x6fa   :  { %v1004_v45 = vmul.f32 1.442695, %v1001_v44 }
 0x6fb   :  { %v1020_v46 = vpop.permute.xlu1 %1019 }
 0x6fc   :  { %2242 = vpow2.f32 %v1004_v45  ;;  %2094 = vmatpush3.msra.mxu0 %v1020_v46 }
 0x6fd   :  { %2103 = vmatprep.subr.mxu0 %v2339_v8 }
 0x6ff   :  { %v1185_v52 = vpop.permute.xlu1 %1184 }
 0x702   :  { %v2241_v47 = vpop.eup %2240 }
 0x703   :  { %v1006_v48 = vsel %vm154_vm2, %v2241_v47, 0.0  ;;  %v1263_v56 = vpop.permute.xlu1 %1262 }
 0x704   :  { %1007 = vadd.xlane.f32.xlu0 %v1006_v48 }
 0x706   :  { %v2243_v14 = vpop.eup %2242 }
 0x707   :  { %v1009_v49 = vsel %vm154_vm2, %v2243_v14, 0.0  ;;  %v1261_v58 = vpop.permute.xlu1 %1260 }
 0x708   :  { %1010 = vadd.xlane.f32.xlu0 %v1009_v49 }
 0x71e   :  { %1182 = vrot.lane.b32.xlu0 %v2471_v12, %s2350_s16 }
 0x791   :  { %v1008_v50 = vpop.xlane.xlu0 %1007 }
 0x792   :  { %2244 = vrcp.f32 %v1008_v50 }
 0x795   :  { %v1011_v51 = vpop.xlane.xlu0 %1010 }
 0x796   :  { %2246 = vrcp.f32 %v1011_v51 }
 0x799   :  { %v1183_v12 = vpop.permute.xlu0 %1182 }
 0x79c   :  { %v2245_v53 = vpop.eup %2244 }
 0x79d   :  { %v1013_v54 = vmul.f32 %v2245_v53, %v2241_v47 }
 0x79f   :  { %1017 = vst.msk [vmem:[#allocation7 + $0x10] sm:$0xff] %vm154_vm2, %v1013_v54  ;;  %2096 = vmatmul.mubr.msk.f32.vlgmr.msra.gmra.mrb[8].mxu0 %vm154_vm2, %v1013_v54 }
 0x7a0   :  { %v2247_v55 = vpop.eup %2246  ;;  %2104 = vmatpush3.xpose.msk.msra.mxu0 %vm154_vm2, %v1185_v52  ;;  %2105 = vmatprep.mubr.msk.f32.mxu0 %vm2340_vm1, %v2339_v8 }
 0x7a1   :  { %v1015_v57 = vmul.f32 %v2247_v55, %v2243_v14  ;;  %2113 = vmatprep.subr.mxu0 %v2339_v8 }
 0x7a3   :  { %1018 = vst.msk [vmem:[#allocation7 + $0x30] sm:$0xff] %vm154_vm2, %v1015_v57  ;;  %2101 = vmatmul.mubr.msk.f32.vlgmr.msra.gmra.mrb[14].mxu1 %vm154_vm2, %v1015_v57  ;;  %2106 = vmatmul.mubr.msk.f32.vlgmr.msra.gmra.mrb[10].mxu0 %vm154_vm2, %v1183_v12 }
 0x7a4   :  { %2109 = vmatpush3.xpose.msk.msra.mxu1 %vm154_vm2, %v1263_v56  ;;  %2110 = vmatprep.mubr.msk.f32.mxu1 %vm2340_vm1, %v2339_v8 }
 0x7a5   :  { %2118 = vmatprep.subr.mxu1 %v2339_v8  ;;  %2115 = vmatprep.mubr.msk.f32.mxu0 %vm2340_vm1, %v2339_v8 }
 0x7a7   :  { %2111 = vmatmul.mubr.msk.f32.vlgmr.msra.gmra.mrb[16].mxu1 %vm154_vm2, %v1261_v58 }
 0x7a8   :  { %2120 = vmatprep.mubr.msk.f32.mxu1 %vm2340_vm1, %v2339_v8 }
 0x872   :  { %v1091_v59 = vpop.f32.mrb[8].mxu0 }
 0x873   :  { %v2097_v60 = vpop.f32.mrb[9].mxu0 }
 0x874   :  { %v1663_v60 = vld [vmem:[%s2733_s3 + $0x8] sm:$0xff] }
 0x876   :  { %v1167_v61 = vpop.f32.mrb[14].mxu1  ;;  %v1256_v62 = vpop.f32.mrb[10].mxu0 }
 0x877   :  { %v1338_v63 = vsel %vm2486_vm3, %v1256_v62, -1e+30  ;;  %v2102_v0 = vpop.f32.mrb[15].mxu1  ;;  %v2107_v1 = vpop.f32.mrb[11].mxu0  ;;  %v1664_v62 = vld [vmem:[%s2733_s3 + $0x10] sm:$0xff] }
 0x878   :  { %v1340_v2 = vsel %vm154_vm2, %v1338_v63, -inf  ;;  %v1756_v1 = vld [vmem:[%s2735_s5] sm:$0xff] }
 0x879   :  { %1341 = vmax.xlane.f32.xlu0 %v1340_v2  ;;  %v1757_v2 = vld [vmem:[%s2735_s5 + $0x8] sm:$0xff] }
 0x87a   :  { %v1334_v3 = vpop.f32.mrb[16].mxu1 }
 0x87b   :  { %v1339_v4 = vsel %vm2486_vm3, %v1334_v3, -1e+30  ;;  %v2112_v6 = vpop.f32.mrb[17].mxu1  ;;  %v1758_v3 = vld [vmem:[%s2735_s5 + $0x10] sm:$0xff] }
 0x87c   :  { %v1343_v11 = vsel %vm154_vm2, %v1339_v4, -inf  ;;  %v1759_v6 = vld [vmem:[%s2735_s5 + $0x18] sm:$0xff] }
 0x87d   :  { %1344 = vmax.xlane.f32.xlu1 %v1343_v11  ;;  %v2192_v11 = vpack.c.bf16 %v1759_v6, %v1758_v3 }
 0x88e   :  { %1365 = vrot.lane.b32.xlu1 %v2464_v10, %s2351_s17 }
 0x892   :  { %827 = vrot.lane.b32.xlu1 %v2560_v27, %s2338_s14 }
 0x896   :  { %829 = vrot.lane.b32.xlu1 %v2562_v29, %s2338_s14 }
 0x89a   :  { %1175 = vrot.lane.b32.xlu1 %v1167_v61, %s2352_s18 }
 0x906   :  { %v1342_v8 = vpop.xlane.xlu0 %1341 }
 0x907   :  { %v1346_v13 = vsub.f32 %v1338_v63, %v1342_v8  ;;  %v1665_v63 = vld [vmem:[%s2733_s3 + $0x18] sm:$0xff]  ;;  %v1760_v8 = vld [vmem:[%s2735_s5 + $0x20] sm:$0xff] }
 0x908   :  { %v2184_v0 = vpack.c.bf16 %v1665_v63, %v1664_v62 }
 0x909   :  { %v1348_v15 = vmul.f32 1.442695, %v1346_v13  ;;  %v1761_v13 = vld [vmem:[%s2735_s5 + $0x28] sm:$0xff] }
 0x90a   :  { %v1345_v18 = vpop.xlane.xlu1 %1344 }
 0x90b   :  { %2248 = vpow2.f32 %v1348_v15  ;;  %v1347_v16 = vsub.f32 %v1339_v4, %v1345_v18  ;;  %v2188_v4 = vpack.c.bf16 %v1757_v2, %v1756_v1  ;;  %v2196_v15 = vpack.c.bf16 %v1761_v13, %v1760_v8 }
 0x90d   :  { %v1350_v17 = vmul.f32 1.442695, %v1347_v16 }
 0x90e   :  { %v1366_v19 = vpop.permute.xlu1 %1365 }
 0x90f   :  { %2250 = vpow2.f32 %v1350_v17  ;;  %2114 = vmatpush3.msra.mxu0 %v1366_v19 }
 0x912   :  { %v828_v10 = vpop.permute.xlu1 %827 }
 0x913   :  { %834 = vst.msk [vmem:[#allocation2] sm:$0xff] %vm833_vm4, %v828_v10 }
 0x915   :  { %v2249_v20 = vpop.eup %2248 }
 0x916   :  { %v830_v21 = vpop.permute.xlu1 %829  ;;  %v1352_v22 = vsel %vm154_vm2, %v2249_v20, 0.0 }
 0x917   :  { %835 = vst.msk [vmem:[#allocation2 + $0x8] sm:$0xff] %vm833_vm4, %v830_v21  ;;  %1353 = vadd.xlane.f32.xlu0 %v1352_v22  ;;  %v1962_v22 = vld [vmem:[%s2737_s7] ss:$0 sm:$0xff] }
 0x919   :  { %v2251_v23 = vpop.eup %2250 }
 0x91a   :  { %v1176_v24 = vpop.permute.xlu1 %1175  ;;  %v1355_v25 = vsel %vm154_vm2, %v2251_v23, 0.0 }
 0x91b   :  { %1181 = vst.msk [vmem:[#allocation2 + $0x8] sm:$0xff] %vm1179_vm5, %v1176_v24  ;;  %1356 = vadd.xlane.f32.xlu0 %v1355_v25  ;;  %v1963_v24 = vld [vmem:[%s2738_s8] ss:$0 sm:$0xff] }
 0x931   :  { %1441 = vrot.lane.b32.xlu0 %v2462_v9, %s2351_s17  ;;  %v1530_v9 = vld [vmem:[%s2732_s2] sm:$0xff] }
 0x932   :  { %v2172_v35 = vpack.c.bf16 %v1531_v34, %v1530_v9  ;;  %v1964_v9 = vld [vmem:[%s2734_s4] ss:$0 sm:$0xff]  ;;  %s2354_s4 = smov [#allocation7]  }
 0x934   :  { %2173 = vmatprep.subr.bf16.mxu0 %v2172_v35 }
 0x935   :  { %1173 = vrot.lane.b32.xlu0 %v1091_v59, %s2352_s18 }
 0x9a4   :  { %v1354_v26 = vpop.xlane.xlu0 %1353 }
 0x9a5   :  { %2252 = vrcp.f32 %v1354_v26 }
 0x9a8   :  { %v1357_v27 = vpop.xlane.xlu0 %1356 }
 0x9a9   :  { %2254 = vrcp.f32 %v1357_v27 }
 0x9ac   :  { %v1442_v28 = vpop.permute.xlu0 %1441 }
 0x9ad   :  { %2119 = vmatpush3.msra.mxu1 %v1442_v28 }
 0x9af   :  { %v2253_v29 = vpop.eup %2252 }
 0x9b0   :  { %v1359_v30 = vmul.f32 %v2253_v29, %v2249_v20  ;;  %v1174_v31 = vpop.permute.xlu0 %1173 }
 0x9b1   :  { %1180 = vst.msk [vmem:[#allocation2] sm:$0xff] %vm1179_vm5, %v1174_v31  ;;  %v1762_v31 = vld [vmem:[%s2735_s5 + $0x30] sm:$0xff] }
 0x9b2   :  { %1363 = vst.msk [vmem:[#allocation7 + $0x18] sm:$0xff] %vm154_vm2, %v1359_v30  ;;  %2116 = vmatmul.mubr.msk.f32.vlgmr.msra.gmra.mrb[12].mxu0 %vm154_vm2, %v1359_v30 }
 0x9b3   :  { %v2255_v32 = vpop.eup %2254  ;;  %2175 = vmatpush3.bf16.msra.mxu0 %v2172_v35 }
 0x9b4   :  { %v1361_v33 = vmul.f32 %v2255_v32, %v2251_v23  ;;  %2177 = vmatprep.subr.bf16.mxu0 %v2176_v38  ;;  %v1763_v32 = vld [vmem:[%s2735_s5 + $0x38] sm:$0xff]  ;;  %s1918_s5 = sshll.u32 %s2354_s4, 4  ;;  %s1919_s5 = int_to_ptr.vmem [resolvable:$true] %s1918_s5 }
 0x9b5   :  { %p2291_p9 = scmp.lt.s32.totalorder %s1919_s5, %s1919_s5 }
 0x9b6   :  { %1364 = vst.msk [vmem:[#allocation7 + $0x38] sm:$0xff] %vm154_vm2, %v1361_v33  ;;  %2121 = vmatmul.mubr.msk.f32.vlgmr.msra.gmra.mrb[18].mxu1 %vm154_vm2, %v1361_v33  ;;  %v2200_v33 = vpack.c.bf16 %v1763_v32, %v1762_v31 }
 0x9b7   :  { %2179 = vmatpush3.bf16.msra.mxu0 %v2176_v38 }
 0x9b8   :  { %2189 = vmatprep.subr.bf16.mxu0 %v2188_v4 }
 0xa85   :  { %v1437_v39 = vpop.f32.mrb[12].mxu0 }
 0xa86   :  { %1519 = vrot.lane.b32.xlu0 %v1437_v39, %s2353_s22  ;;  %v2117_v40 = vpop.f32.mrb[13].mxu0 }
 0xa87   :  { %v1967_v40 = vld [vmem:[%s2736_s6] ss:$0 sm:$0xff]  ;;  %s2286_s6 = scalar_lea.vmem %s1919_s5, 1024 }
 0xa88   :  { %p2287_p8 = scmp.ne.s32.totalorder %s1919_s5, %s2286_s6  ;;  %p2292_p10 = scmp.lt.s32.totalorder %s2286_s6, %s2286_s6 }
 0xa89   :  { %v1513_v41 = vpop.f32.mrb[18].mxu1 }
 0xa8a   :  { %1521 = vrot.lane.b32.xlu1 %v1513_v41, %s2353_s22  ;;  %v2122_v42 = vpop.f32.mrb[19].mxu1  ;;  %p2293_p11 = por %p2292_p10, %p2291_p9 }
 0xa8c   :  { %p2294_p12 = pnand %p2293_p11, %p2287_p8 }
 0xaf8   :  { %v1520_v43 = vpop.permute.xlu0 %1519 }
 0xaf9   :  { %1526 = vst.msk [vmem:[#allocation2] sm:$0xff] %vm1525_vm6, %v1520_v43 }
 0xafc   :  { %v1522_v44 = vpop.permute.xlu1 %1521 }
 0xafd   :  { %1527 = vst.msk [vmem:[#allocation2 + $0x8] sm:$0xff] %vm1525_vm6, %v1522_v44 }
 0xb00   :  { %v1528_v45 = vld [vmem:[#allocation2] sm:$0xff] }
 0xb01   :  { %2131 = vmatprep.mubr.msk.f32.mxu0 %vm62_vm0, %v1528_v45 }
 0xb04   :  { %v1529_v46 = vld [vmem:[#allocation2 + $0x8] sm:$0xff] }
 0xb05   :  { %2132 = vmatmul.mubr.msk.f32.vlgmr.msra.gmra.mrb[14].mxu0 %vm62_vm0, %v1529_v46 }
 0xb06   :  { %2191 = vmatpush3.bf16.msra.mxu0 %v2188_v4 }
 0xb07   :  { %2193 = vmatprep.subr.bf16.mxu0 %v2192_v11 }
 0xb0a   :  { %2195 = vmatpush3.bf16.msra.mxu0 %v2192_v11 }
 0xb0b   :  { %2197 = vmatprep.subr.bf16.mxu0 %v2196_v15 }
 0xb0e   :  { %2199 = vmatpush3.bf16.msra.mxu0 %v2196_v15 }
 0xb0f   :  { %2201 = vmatprep.subr.bf16.mxu0 %v2200_v33 }
 0xb12   :  { %2203 = vmatpush3.bf16.msra.mxu0 %v2200_v33 }
 0xbd8   :  { %v2133_v47 = vpop.f32.mrb[14].mxu0 }
 0xbd9   :  { %v1616_v48 = vadd.f32 %v2133_v47, %v2452_v7  ;;  %v1606_v14 = vpop.f32.mrb[15].mxu0 }
 0xbda   :  { %v1615_v49 = vadd.f32 %v1606_v14, %v2448_v5  ;;  %v1662_v5 = vld [vmem:[%s2733_s3] sm:$0xff] }
 0xbdb   :  { %v1620_v50 = vsel %vm62_vm0, %v1616_v48, 0.0  ;;  %v2180_v61 = vpack.c.bf16 %v1663_v60, %v1662_v5 }
 0xbdc   :  { %1621 = vadd.xlane.f32.xlu1 %v1620_v50  ;;  %v1617_v51 = vsel %vm62_vm0, %v1615_v49, 0.0 }
 0xbdd   :  { %1618 = vadd.xlane.f32.xlu0 %v1617_v51  ;;  %2181 = vmatprep.subr.bf16.mxu1 %v2180_v61 }
 0xbde   :  { %2183 = vmatpush3.bf16.msra.mxu1 %v2180_v61 }
 0xbdf   :  { %2185 = vmatprep.subr.bf16.mxu1 %v2184_v0 }
 0xbe2   :  { %2187 = vmatpush3.bf16.msra.mxu1 %v2184_v0 }
 0xc69   :  { %v1622_v52 = vpop.xlane.xlu1 %1621 }
 0xc6a   :  { %v1625_v53 = vmul.f32 0.03125, %v1622_v52  ;;  %v1619_v54 = vpop.xlane.xlu0 %1618 }
 0xc6b   :  { %v1624_v55 = vmul.f32 0.03125, %v1619_v54 }
 0xc6c   :  { %v1627_v56 = vsub.f32 %v1616_v48, %v1625_v53 }
 0xc6d   :  { %v1626_v57 = vsub.f32 %v1615_v49, %v1624_v55 }
 0xc6e   :  { %v1629_v59 = vmul.f32 %v1627_v56, %v1627_v56 }
 0xc6f   :  { %v1628_v12 = vmul.f32 %v1626_v57, %v1626_v57 }
 0xc70   :  { %v1633_v7 = vsel %vm62_vm0, %v1629_v59, 0.0 }
 0xc71   :  { %v1630_v58 = vsel %vm62_vm0, %v1628_v12, 0.0 }
 0xc72   :  { %1631 = vadd.xlane.f32.xlu0 %v1630_v58 }
 0xc76   :  { %1634 = vadd.xlane.f32.xlu0 %v1633_v7 }
 0xcff   :  { %v1632_v18 = vpop.xlane.xlu0 %1631 }
 0xd00   :  { %v1636_v16 = vmul.f32 0.03125, %v1632_v18 }
 0xd02   :  { %v1638_v17 = vadd.f32 1e-05, %v1636_v16 }
 0xd03   :  { %v1635_v19 = vpop.xlane.xlu0 %1634 }
 0xd04   :  { %2256 = vrsqrt.f32 %v1638_v17  ;;  %v1637_v10 = vmul.f32 0.03125, %v1635_v19 }
 0xd06   :  { %v1639_v20 = vadd.f32 1e-05, %v1637_v10 }
 0xd08   :  { %2258 = vrsqrt.f32 %v1639_v20 }
 0xd0e   :  { %v2257_v21 = vpop.eup %2256 }
 0xd0f   :  { %v1642_v23 = vmul.f32 %v2257_v21, %v1626_v57 }
 0xd11   :  { %v1651_v25 = vmul.f32 %v1962_v22, %v1642_v23 }
 0xd12   :  { %v2259_v26 = vpop.eup %2258 }
 0xd13   :  { %v1643_v27 = vmul.f32 %v2259_v26, %v1627_v56  ;;  %v1660_v28 = vadd.f32 %v1963_v24, %v1651_v25 }
 0xd15   :  { %v1652_v29 = vmul.f32 %v1962_v22, %v1643_v27  ;;  %2142 = vmatprep.mubr.msk.f32.mxu1 %vm62_vm0, %v1660_v28 }
 0xd17   :  { %v1661_v30 = vadd.f32 %v1963_v24, %v1652_v29 }
 0xd19   :  { %2143 = vmatmul.mubr.msk.f32.vlgmr.msra.gmra.mrb[20].mxu1 %vm62_vm0, %v1661_v30 }
 0xdec   :  { %v2144_v34 = vpop.f32.mrb[20].mxu1 }
 0xded   :  { %v1751_v35 = vadd.f32 %v2144_v34, %v1964_v9  ;;  %v1745_v36 = vpop.f32.mrb[21].mxu1 }
 0xdee   :  { %v1746_v37 = vadd.f32 %v1964_v9, %v1745_v36 }
 0xdef   :  { %v1755_v39 = vmax.f32 %v1751_v35, 0.0 }
 0xdf0   :  { %v1754_v38 = vmax.f32 %v1746_v37, 0.0 }
 0xdf2   :  { %2161 = vmatprep.mubr.msk.f32.mxu0 %vm1771_vm7, %v1754_v38 }
 0xdf3   :  { %2162 = vmatmul.mubr.msk.f32.vlgmr.msra.gmra.mrb[16].mxu0 %vm1771_vm7, %v1755_v39 }
 0xec6   :  { %v2163_v41 = vpop.f32.mrb[16].mxu0 }
 0xec7   :  { %v1850_v42 = vadd.f32 %v2163_v41, %v1967_v40  ;;  %v1844_v43 = vpop.f32.mrb[17].mxu0 }
 0xec8   :  { %v1845_v44 = vadd.f32 %v1967_v40, %v1844_v43 }
 0xec9   :  { %v1854_v45 = vadd.f32 %v1850_v42, %v1661_v30 }
 0xeca   :  { %v1853_v46 = vadd.f32 %v1845_v44, %v1660_v28 }
 0xecb   :  { %v1858_v47 = vsel %vm62_vm0, %v1854_v45, 0.0 }
 0xecc   :  { %1859 = vadd.xlane.f32.xlu0 %v1858_v47  ;;  %v1855_v48 = vsel %vm62_vm0, %v1853_v46, 0.0 }
 0xecd   :  { %1856 = vadd.xlane.f32.xlu1 %v1855_v48 }
 0xf59   :  { %v1860_v14 = vpop.xlane.xlu0 %1859 }
 0xf5a   :  { %v1862_v49 = vmul.f32 0.03125, %v1860_v14  ;;  %v1857_v50 = vpop.xlane.xlu1 %1856 }
 0xf5b   :  { %v1861_v51 = vmul.f32 0.03125, %v1857_v50 }
 0xf5c   :  { %v1864_v52 = vsub.f32 %v1854_v45, %v1862_v49 }
 0xf5d   :  { %v1863_v53 = vsub.f32 %v1853_v46, %v1861_v51 }
 0xf5e   :  { %v1866_v54 = vmul.f32 %v1864_v52, %v1864_v52 }
 0xf5f   :  { %v1865_v55 = vmul.f32 %v1863_v53, %v1863_v53 }
 0xf60   :  { %v1870_v56 = vsel %vm62_vm0, %v1866_v54, 0.0 }
 0xf61   :  { %1871 = vadd.xlane.f32.xlu0 %v1870_v56  ;;  %v1867_v57 = vsel %vm62_vm0, %v1865_v55, 0.0 }
 0xf62   :  { %1868 = vadd.xlane.f32.xlu1 %v1867_v57 }
 0xf63   :  { %2297 = shalt.err (!%p2294_p12)
}
 0xf64   :  { %s2298_s21 = scalar_lea.hbm %s2742_s12, 1024 }
 0xf65   :  { %p2299_p13 = scmp.ne.s32.totalorder %s2742_s12, %s2298_s21  ;;  %p2302_p0 = scmp.lt.u32.totalorder %s2298_s21, %s2742_s12 }
 0xf67   :  { %p2304_p1 = pnand %p2302_p0, %p2299_p13 }
 0xf69   :  { %2307 = shalt.err (!%p2304_p1)
}
 0xf6a   :  { %1924 = dma.vmem_to_hbm [thread:$0]  %s1919_s5, 1024, %s2742_s12, [#allocation8], %s2337_s13, %s2337_s13, %s2338_s14  }
 0xf6b   :  { %v1970_v62 = vld [vmem:[%s2739_s9] ss:$0 sm:$0xff]  ;;  %s2355_s12 = smov [#allocation6]  }
 0xf6c   :  { %v1971_v2 = vld [vmem:[%s2740_s10] ss:$0 sm:$0xff]  ;;  %s1906_s28 = sshll.u32 %s2355_s12, 4  ;;  %s1907_s28 = int_to_ptr.vmem [resolvable:$true] %s1906_s28 }
 0xf6d   :  { %s2308_s29 = scalar_lea.vmem %s1907_s28, 256  ;;  %p2313_p3 = scmp.lt.s32.totalorder %s1907_s28, %s1907_s28 }
 0xf6e   :  { %p2309_p2 = scmp.ne.s32.totalorder %s1907_s28, %s2308_s29  ;;  %p2314_p4 = scmp.lt.s32.totalorder %s2308_s29, %s2308_s29 }
 0xf70   :  { %p2315_p5 = por %p2314_p4, %p2313_p3 }
 0xf72   :  { %p2316_p6 = pnand %p2315_p5, %p2309_p2 }
 0xfee   :  { %v1872_v12 = vpop.xlane.xlu0 %1871 }
 0xfef   :  { %v1874_v58 = vmul.f32 0.03125, %v1872_v12  ;;  %v1869_v59 = vpop.xlane.xlu1 %1868 }
 0xff0   :  { %v1873_v7 = vmul.f32 0.03125, %v1869_v59 }
 0xff1   :  { %v1876_v5 = vadd.f32 1e-05, %v1874_v58 }
 0xff2   :  { %v1875_v60 = vadd.f32 1e-05, %v1873_v7 }
 0xff3   :  { %2260 = vrsqrt.f32 %v1876_v5 }
 0xff4   :  { %2262 = vrsqrt.f32 %v1875_v60 }
 0xffd   :  { %v2261_v61 = vpop.eup %2260 }
 0xffe   :  { %v2263_v63 = vpop.eup %2262  ;;  %v1880_v0 = vmul.f32 %v2261_v61, %v1864_v52 }
 0xfff   :  { %v1879_v1 = vmul.f32 %v2263_v63, %v1863_v53 }
0x1000   :  { %v1889_v3 = vmul.f32 %v1970_v62, %v1880_v0 }
0x1001   :  { %v1888_v4 = vmul.f32 %v1970_v62, %v1879_v1 }
0x1002   :  { %v1898_v6 = vadd.f32 %v1971_v2, %v1889_v3 }
0x1003   :  { %v1897_v11 = vadd.f32 %v1971_v2, %v1888_v4 }
0x1004   :  { %1900 = vst.msk [vmem:[#allocation6 + $0x8] sm:$0xff] %vm62_vm0, %v1898_v6 }
0x1005   :  { %1899 = vst.msk [vmem:[#allocation6] sm:$0xff] %vm62_vm0, %v1897_v11 }
0x1006   :  { %2319 = shalt.err (!%p2316_p6)
}
0x1007   :  { %s2320_s30 = scalar_lea.hbm %s2741_s11, 256 }
0x1008   :  { %p2321_p7 = scmp.ne.s32.totalorder %s2741_s11, %s2320_s30  ;;  %p2324_p8 = scmp.lt.u32.totalorder %s2320_s30, %s2741_s11 }
0x100a   :  { %p2326_p9 = pnand %p2324_p8, %p2321_p7 }
0x100c   :  { %2329 = shalt.err (!%p2326_p9)
}
0x100d   :  { %1912 = dma.vmem_to_hbm [thread:$0]  %s1907_s28, 256, %s2741_s11, [#allocation5], %s2337_s13, %s2337_s13, %s2338_s14  }
0x100e   :  { %2332 = dma.done.wait [#allocation5], 256  }
0x100f   :  { %2333 = vsyncadd [#allocation5], 4294967040 }
0x1010   :  { %2334 = dma.done.wait [#allocation8], 1024  }
0x1011   :  { %2335 = vsyncadd [#allocation8], 4294966272 }
0x1012   :  { %1931 = vsyncpa [#allocation4], 1 }
0x1013   :  { %1932 = vsyncpa [#allocation5], 1 }
0x1014   :  { %1933 = vsyncpa [#allocation8], 1 }

</bundles_post_ra>
